<compile_context>
chip_gen: v6e
topology: v6e:2x2x1
jax: 0.10.0
libtpu: 0.0.40
codegen_flags: <defaults>
</compile_context>

<pallas_src>
import functools
import math

import jax
import jax.numpy as jnp
from jax.experimental import pallas as pl
from jax.experimental.pallas import tpu as pltpu


def _round_up(x, m):
    return ((x + m - 1) // m) * m


def _pick_tile(n, candidates, cap=None):
    """Largest candidate that divides n and is <= cap (cap defaults to n)."""
    cap = n if cap is None else cap
    for c in candidates:
        if c <= cap and n % c == 0:
            return c
    return n


@functools.lru_cache(maxsize=None)
def _vmem_budget_bytes():
    """~75% of physical per-core VMEM (48 MiB on v7x, 96 MiB on v5e/v6e)."""
    try:
        cap = int(pltpu.get_tpu_info().vmem_capacity_bytes)
    except Exception:  # pragma: no cover - conservative fallback (v7x size)
        cap = 64 * 1024 * 1024
    return (cap * 3) // 4


# --------------------------------------------------------------------------
# Stage 1: XW = inputs @ weight  (small GEMM, row-tiled)
# --------------------------------------------------------------------------
def _xw_kernel(x_ref, w_ref, xw_ref):
    xw_ref[...] = jnp.dot(
        x_ref[...], w_ref[...], preferred_element_type=jnp.float32
    ).astype(xw_ref.dtype)


# --------------------------------------------------------------------------
# Stage 2: out = activation(adj @ XW), K-tiled f32 accumulation
# --------------------------------------------------------------------------
def _make_agg_kernel_resident(apply_relu, tk):
    """XW fully resident in VMEM; K slab sliced in-kernel."""

    def kernel(adj_ref, xw_ref, out_ref, acc_ref):
        k = pl.program_id(1)

        @pl.when(k == 0)
        def _():
            acc_ref[...] = jnp.zeros_like(acc_ref)

        off = pl.multiple_of(k * tk, 128)
        acc_ref[...] += jnp.dot(
            adj_ref[...], xw_ref[pl.ds(off, tk), :],
            preferred_element_type=jnp.float32,
        )

        @pl.when(k == pl.num_programs(1) - 1)
        def _():
            res = acc_ref[...]
            if apply_relu:
                res = jnp.maximum(res, 0.0)
            out_ref[...] = res.astype(out_ref.dtype)

    return kernel


def _make_agg_kernel_slab(apply_relu):
    """Fallback: XW streamed as (tk, d_out_p) slabs when it cannot stay resident."""

    def kernel(adj_ref, xw_ref, out_ref, acc_ref):
        k = pl.program_id(1)

        @pl.when(k == 0)
        def _():
            acc_ref[...] = jnp.zeros_like(acc_ref)

        acc_ref[...] += jnp.dot(
            adj_ref[...], xw_ref[...], preferred_element_type=jnp.float32
        )

        @pl.when(k == pl.num_programs(1) - 1)
        def _():
            res = acc_ref[...]
            if apply_relu:
                res = jnp.maximum(res, 0.0)
            out_ref[...] = res.astype(out_ref.dtype)

    return kernel


# --------------------------------------------------------------------------
# One GraphConvSparse layer on pre-padded inputs.
# --------------------------------------------------------------------------
def _graph_conv_padded(x_p, weight, *, adj_p, apply_relu, out_dtype,
                       compute_dtype=jnp.bfloat16):
    """activation(adj_p @ (x_p @ weight)) on zero-padded bf16 operands.

    x_p:   (n_p, d_in_p)  compute_dtype, zero-padded rows/cols, d_in_p % 128 == 0
    adj_p: (n_p, n_p)     compute_dtype, zero-padded
    weight:(d_in, d_out)  f32, d_in <= d_in_p
    returns (n_p, d_out_p) out_dtype (padding rows/cols stay exactly zero).
    """
    n_p, d_in_p = x_p.shape
    assert adj_p.shape == (n_p, n_p)
    d_in, d_out = weight.shape
    assert d_in <= d_in_p
    d_out_p = _round_up(d_out, 128)

    itemsize = jnp.dtype(compute_dtype).itemsize
    out_itemsize = jnp.dtype(out_dtype).itemsize
    budget = _vmem_budget_bytes()

    # Zero row/col padding of the weight keeps padded x columns inert.
    w_p = jnp.pad(weight.astype(compute_dtype),
                  ((0, d_in_p - d_in), (0, d_out_p - d_out)))

    # ---- stage 1: XW = x_p @ w_p (negligible work, hoisted out of adj grid) ----
    tm1 = _pick_tile(n_p, (1024, 512, 256, 128))
    xw = pl.pallas_call(
        _xw_kernel,
        out_shape=jax.ShapeDtypeStruct((n_p, d_out_p), compute_dtype),
        grid_spec=pltpu.PrefetchScalarGridSpec(
            num_scalar_prefetch=0,
            grid=(n_p // tm1,),
            in_specs=[
                pl.BlockSpec((tm1, d_in_p), lambda i: (i, 0)),
                pl.BlockSpec((d_in_p, d_out_p), lambda i: (0, 0)),
            ],
            out_specs=pl.BlockSpec((tm1, d_out_p), lambda i: (i, 0)),
        ),
        compiler_params=pltpu.CompilerParams(
            dimension_semantics=("parallel",),
            vmem_limit_bytes=budget,
        ),
    )(x_p, w_p)

    # ---- stage 2: out = activation(adj_p @ XW) ----
    # Keep >= 2 row tiles whenever possible so v7x's 2 TensorCores both work.
    tm_cap = n_p // 2 if n_p >= 256 else n_p
    tm = _pick_tile(n_p, (2048, 1024, 512, 256, 128), cap=tm_cap)

    xw_resident_bytes = 2 * n_p * d_out_p * itemsize  # conservative: 2 buffers
    xw_resident = xw_resident_bytes <= budget // 4

    def footprint(tm_, tk_):
        f = 2 * tm_ * tk_ * itemsize                                   # adj, 2 bufs
        f += xw_resident_bytes if xw_resident else 2 * tk_ * d_out_p * itemsize
        f += 2 * tm_ * d_out_p * out_itemsize                          # out, 2 bufs
        f += tm_ * d_out_p * 4                                         # f32 acc
        return f

    margin = 4 << 20
    tk = None
    for cand in (4096, 2048, 1024, 512, 256, 128):
        if cand <= n_p and n_p % cand == 0 and footprint(tm, cand) <= budget - margin:
            tk = cand
            break
    if tk is None:
        tk = 128
        while footprint(tm, tk) > budget - margin and tm > 128:
            tm //= 2

    if xw_resident:
        kernel = _make_agg_kernel_resident(apply_relu, tk)
        xw_spec = pl.BlockSpec((n_p, d_out_p), lambda i, k: (0, 0))  # DMA'd once
    else:
        kernel = _make_agg_kernel_slab(apply_relu)
        xw_spec = pl.BlockSpec((tk, d_out_p), lambda i, k: (k, 0))

    out_p = pl.pallas_call(
        kernel,
        out_shape=jax.ShapeDtypeStruct((n_p, d_out_p), out_dtype),
        grid_spec=pltpu.PrefetchScalarGridSpec(
            num_scalar_prefetch=0,
            grid=(n_p // tm, n_p // tk),
            in_specs=[
                pl.BlockSpec((tm, tk), lambda i, k: (i, k)),   # adj tile (dominant)
                xw_spec,
            ],
            out_specs=pl.BlockSpec((tm, d_out_p), lambda i, k: (i, 0)),
            scratch_shapes=[pltpu.VMEM((tm, d_out_p), jnp.float32)],
        ),
        compiler_params=pltpu.CompilerParams(
            dimension_semantics=("parallel", "arbitrary"),
            vmem_limit_bytes=budget,
        ),
    )(adj_p, xw)
    return out_p


# --------------------------------------------------------------------------
# Parameter init (mirrors the PyTorch module, residual weights unused in fwd)
# --------------------------------------------------------------------------
def glorot_init(key, input_dim, output_dim, dtype=jnp.float32):
    init_range = math.sqrt(6.0 / (input_dim + output_dim))
    return jax.random.uniform(key, (input_dim, output_dim), dtype=dtype,
                              minval=-init_range, maxval=init_range)


def init_gcn_params(key, num_hidden_layers, input_dim, hidden_dim, output_dim,
                    use_input_augmentation, use_output_augmentation):
    hidden_input_dim = hidden_dim + input_dim if use_input_augmentation else hidden_dim
    output_input_dim = ((num_hidden_layers + 1) * hidden_dim + input_dim
                        if use_output_augmentation else hidden_dim)
    keys = iter(jax.random.split(key, 2 * (num_hidden_layers + 2)))
    params = {
        "input_w": glorot_init(next(keys), input_dim, hidden_dim),
        # residual_weight exists in the module __init__ but is unused in forward.
        "input_residual_w": glorot_init(next(keys), input_dim, hidden_dim),
        "hidden_ws": [],
        "hidden_residual_ws": [],
    }
    for _ in range(num_hidden_layers):
        params["hidden_ws"].append(glorot_init(next(keys), hidden_input_dim, hidden_dim))
        params["hidden_residual_ws"].append(glorot_init(next(keys), hidden_input_dim, hidden_dim))
    params["output_w"] = glorot_init(next(keys), output_input_dim, output_dim)
    params["output_residual_w"] = glorot_init(next(keys), output_input_dim, output_dim)
    return params


# --------------------------------------------------------------------------
# GCN forward: adjacency padded/cast once; bf16 padded intermediates.
# --------------------------------------------------------------------------
def gcn_forward(params, x, initial_x, adj, *, use_input_augmentation,
                use_output_augmentation, compute_dtype=jnp.bfloat16):
    N = adj.shape[0]
    n_p = _round_up(N, 128)
    input_dim = initial_x.shape[1]
    hidden_dim = params["input_w"].shape[1]
    d_out = params["output_w"].shape[1]

    # Adjacency cast + pad done ONCE for all layers.
    adj_p = jnp.pad(adj.astype(compute_dtype), ((0, n_p - N), (0, n_p - N)))

    def pad_feats(a):
        r, c = a.shape
        return jnp.pad(a.astype(compute_dtype),
                       ((0, n_p - r), (0, _round_up(c, 128) - c)))

    x0_p = pad_feats(initial_x)   # kept around for augmentation concats
    x_p = pad_feats(x)

    conv = functools.partial(_graph_conv_padded, adj_p=adj_p,
                             compute_dtype=compute_dtype)

    # Hidden activations stay padded (n_p, 128) and in bf16 between layers.
    h_p = conv(x_p, params["input_w"], apply_relu=True, out_dtype=compute_dtype)
    x_list = [(x0_p, input_dim), (h_p, hidden_dim)]

    for w in params["hidden_ws"]:
        if use_input_augmentation:
            cat = jnp.concatenate([x0_p[:, :input_dim], h_p[:, :hidden_dim]], axis=1)
            cat = jnp.pad(cat, ((0, 0), (0, _round_up(cat.shape[1], 128) - cat.shape[1])))
            h_p = conv(cat, w, apply_relu=True, out_dtype=compute_dtype)
        else:
            h_p = conv(h_p, w, apply_relu=True, out_dtype=compute_dtype)
        x_list.append((h_p, hidden_dim))

    if use_output_augmentation:
        cat = jnp.concatenate([a[:, :d] for a, d in x_list], axis=1)
        cat = jnp.pad(cat, ((0, 0), (0, _round_up(cat.shape[1], 128) - cat.shape[1])))
        out_p = conv(cat, params["output_w"], apply_relu=False, out_dtype=jnp.float32)
    else:
        out_p = conv(h_p, params["output_w"], apply_relu=False, out_dtype=jnp.float32)

    return out_p[:N, :d_out]


# --------------------------------------------------------------------------
# Pure-JAX f32 reference (matches the PyTorch forward)
# --------------------------------------------------------------------------
def gcn_reference(params, x, initial_x, adj, *, use_input_augmentation,
                  use_output_augmentation):
    def layer(h, w, act):
        return act(adj @ (h @ w))

    x_list = [initial_x]
    x = layer(x, params["input_w"], jax.nn.relu)
    x_list.append(x)
    for w in params["hidden_ws"]:
        h = jnp.concatenate([initial_x, x], axis=1) if use_input_augmentation else x
        x = layer(h, w, jax.nn.relu)
        x_list.append(x)
    if use_output_augmentation:
        return layer(jnp.concatenate(x_list, axis=1), params["output_w"], lambda v: v)
    return layer(x, params["output_w"], lambda v: v)


if __name__ == "__main__":
    N = 256
    INPUT_DIM = 64
    HIDDEN_DIM = 32
    OUTPUT_DIM = 16
    NUM_HIDDEN_LAYERS = 2
    USE_INPUT_AUG = True
    USE_OUTPUT_AUG = True

    key = jax.random.PRNGKey(0)
    k_feat, k_adj, k_params = jax.random.split(key, 3)

    features = jax.random.normal(k_feat, (N, INPUT_DIM), dtype=jnp.float32)
    # Dense row-normalized adjacency stand-in (~10% dense + self loops).
    adj = (jax.random.uniform(k_adj, (N, N)) < 0.1).astype(jnp.float32)
    adj = adj + jnp.eye(N, dtype=jnp.float32)
    adj = adj / jnp.sum(adj, axis=1, keepdims=True)

    params = init_gcn_params(k_params, NUM_HIDDEN_LAYERS, INPUT_DIM, HIDDEN_DIM,
                             OUTPUT_DIM, USE_INPUT_AUG, USE_OUTPUT_AUG)

    fwd = jax.jit(functools.partial(
        gcn_forward,
        use_input_augmentation=USE_INPUT_AUG,
        use_output_augmentation=USE_OUTPUT_AUG,
        compute_dtype=jnp.bfloat16,
    ))
    out = jax.block_until_ready(fwd(params, features, features, adj))

    ref = gcn_reference(params, features, features, adj,
                        use_input_augmentation=USE_INPUT_AUG,
                        use_output_augmentation=USE_OUTPUT_AUG)
    assert out.shape == (N, OUTPUT_DIM)
    max_err = jnp.max(jnp.abs(out - ref))
    # bf16 MXU operands with f32 accumulation -> loosened tolerance.
    assert jnp.allclose(out, ref, atol=5e-2, rtol=5e-2), f"max |err| = {max_err}"
    print("KERNEL_OK")
</pallas_src>

<mosaic_0001>
module attributes {stable_mosaic.version = 11 : i64} {
  func.func @_xw_kernel(%arg0: i32, %arg1: memref<256x128xbf16, #tpu.memory_space<vmem>>, %arg2: memref<128x128xbf16, #tpu.memory_space<vmem>>, %arg3: memref<256x128xbf16, #tpu.memory_space<vmem>>) attributes {dimension_semantics = [#tpu.dimension_semantics<parallel>], iteration_bounds = array<i64: 1>, scalar_prefetch = 0 : i64, scratch_operands = 0 : i64, tpu.core_type = #tpu.core_type<tc>, window_params = [{transform_indices = @transform_0, window_bounds = array<i64: 256, 128>}, {pipeline_mode = #tpu.pipeline_mode<synchronous>, transform_indices = @transform_1, window_bounds = array<i64: 128, 128>}, {transform_indices = @transform_2, window_bounds = array<i64: 256, 128>}]} {
    %c0 = arith.constant 0 : index
    %c0_0 = arith.constant 0 : index
    %0 = vector.load %arg1[%c0, %c0_0] : memref<256x128xbf16, #tpu.memory_space<vmem>>, vector<256x128xbf16>
    %c0_1 = arith.constant 0 : index
    %c0_2 = arith.constant 0 : index
    %1 = vector.load %arg2[%c0_1, %c0_2] : memref<128x128xbf16, #tpu.memory_space<vmem>>, vector<128x128xbf16>
    %cst = arith.constant dense<0.000000e+00> : vector<256x128xf32>
    %2 = tpu.matmul %0, %1, %cst {dimension_numbers = #tpu.dot_dimension_numbers<[1], [0], [0], [1], [0, 0, 1, 1], [], []>} : vector<256x128xbf16>, vector<128x128xbf16>, vector<256x128xf32> -> vector<256x128xf32>
    %3 = arith.truncf %2 : vector<256x128xf32> to vector<256x128xbf16>
    %c0_3 = arith.constant 0 : index
    %c0_4 = arith.constant 0 : index
    %4 = vector.load %arg3[%c0_3, %c0_4] : memref<256x128xbf16, #tpu.memory_space<vmem>>, vector<256x128xbf16>
    tpu.vector_store %arg3[%c0_3, %c0_4], %3 {strides = array<i32>} : memref<256x128xbf16, #tpu.memory_space<vmem>>, vector<256x128xbf16>,
    return
  }
  func.func @transform_0(%arg0: i32) -> (i32, i32) {
    %c0_i32 = arith.constant 0 : i32
    %c0_i32_0 = arith.constant 0 : i32
    return %arg0, %c0_i32 : i32, i32
  }
  func.func @transform_1(%arg0: i32) -> (i32, i32) {
    %c0_i32 = arith.constant 0 : i32
    %c0_i32_0 = arith.constant 0 : i32
    %c0_i32_1 = arith.constant 0 : i32
    return %c0_i32, %c0_i32_0 : i32, i32
  }
  func.func @transform_2(%arg0: i32) -> (i32, i32) {
    %c0_i32 = arith.constant 0 : i32
    %c0_i32_0 = arith.constant 0 : i32
    return %arg0, %c0_i32 : i32, i32
  }
}

module attributes {stable_mosaic.version = 11 : i64} {
  func.func @kernel(%arg0: i32, %arg1: i32, %arg2: memref<128x256xbf16, #tpu.memory_space<vmem>>, %arg3: memref<256x128xbf16, #tpu.memory_space<vmem>>, %arg4: memref<128x128xbf16, #tpu.memory_space<vmem>>, %arg5: memref<128x128xf32, #tpu.memory_space<vmem>>) attributes {dimension_semantics = [#tpu.dimension_semantics<parallel>, #tpu.dimension_semantics<arbitrary>], iteration_bounds = array<i64: 2, 1>, scalar_prefetch = 0 : i64, scratch_operands = 1 : i64, tpu.core_type = #tpu.core_type<tc>, window_params = [{transform_indices = @transform_0, window_bounds = array<i64: 128, 256>}, {pipeline_mode = #tpu.pipeline_mode<synchronous>, transform_indices = @transform_1, window_bounds = array<i64: 256, 128>}, {transform_indices = @transform_2, window_bounds = array<i64: 128, 128>}]} {
    %c0_i32 = arith.constant 0 : i32
    %0 = arith.cmpi eq, %arg1, %c0_i32 : i32
    %1 = arith.extui %0 : i1 to i32
    %c0_i32_0 = arith.constant 0 : i32
    %2 = arith.cmpi ne, %1, %c0_i32_0 : i32
    scf.if %2 {
      %cst_9 = arith.constant 0.000000e+00 : f32
      %15 = vector.broadcast %cst_9 : f32 to vector<128x128xf32>
      %c0_10 = arith.constant 0 : index
      %c0_11 = arith.constant 0 : index
      %16 = vector.load %arg5[%c0_10, %c0_11] : memref<128x128xf32, #tpu.memory_space<vmem>>, vector<128x128xf32>
      tpu.vector_store %arg5[%c0_10, %c0_11], %15 {strides = array<i32>} : memref<128x128xf32, #tpu.memory_space<vmem>>, vector<128x128xf32>,
    } else {
    }
    %c256_i32 = arith.constant 256 : i32
    %3 = arith.muli %arg1, %c256_i32 : i32
    %4 = tpu.assume_multiple %3, 128 : i32
    %c0 = arith.constant 0 : index
    %c0_1 = arith.constant 0 : index
    %5 = vector.load %arg5[%c0, %c0_1] : memref<128x128xf32, #tpu.memory_space<vmem>>, vector<128x128xf32>
    %c0_2 = arith.constant 0 : index
    %c0_3 = arith.constant 0 : index
    %6 = vector.load %arg2[%c0_2, %c0_3] : memref<128x256xbf16, #tpu.memory_space<vmem>>, vector<128x256xbf16>
    %7 = arith.index_cast %4 : i32 to index
    %c0_4 = arith.constant 0 : index
    %8 = vector.load %arg3[%7, %c0_4] : memref<256x128xbf16, #tpu.memory_space<vmem>>, vector<256x128xbf16>
    %cst = arith.constant dense<0.000000e+00> : vector<128x128xf32>
    %9 = tpu.matmul %6, %8, %cst {dimension_numbers = #tpu.dot_dimension_numbers<[1], [0], [0], [1], [0, 0, 1, 1], [], []>} : vector<128x256xbf16>, vector<256x128xbf16>, vector<128x128xf32> -> vector<128x128xf32>
    %10 = arith.addf %5, %9 : vector<128x128xf32>
    %c0_5 = arith.constant 0 : index
    %c0_6 = arith.constant 0 : index
    %11 = vector.load %arg5[%c0_5, %c0_6] : memref<128x128xf32, #tpu.memory_space<vmem>>, vector<128x128xf32>
    tpu.vector_store %arg5[%c0_5, %c0_6], %10 {strides = array<i32>} : memref<128x128xf32, #tpu.memory_space<vmem>>, vector<128x128xf32>,
    %c0_i32_7 = arith.constant 0 : i32
    %12 = arith.cmpi eq, %arg1, %c0_i32_7 : i32
    %13 = arith.extui %12 : i1 to i32
    %c0_i32_8 = arith.constant 0 : i32
    %14 = arith.cmpi ne, %13, %c0_i32_8 : i32
    scf.if %14 {
      %c0_9 = arith.constant 0 : index
      %c0_10 = arith.constant 0 : index
      %15 = vector.load %arg5[%c0_9, %c0_10] : memref<128x128xf32, #tpu.memory_space<vmem>>, vector<128x128xf32>
      %cst_11 = arith.constant 0.000000e+00 : f32
      %16 = vector.broadcast %cst_11 : f32 to vector<128x128xf32>
      %17 = arith.maximumf %15, %16 : vector<128x128xf32>
      %18 = arith.truncf %17 : vector<128x128xf32> to vector<128x128xbf16>
      %c0_12 = arith.constant 0 : index
      %c0_13 = arith.constant 0 : index
      %19 = vector.load %arg4[%c0_12, %c0_13] : memref<128x128xbf16, #tpu.memory_space<vmem>>, vector<128x128xbf16>
      tpu.vector_store %arg4[%c0_12, %c0_13], %18 {strides = array<i32>} : memref<128x128xbf16, #tpu.memory_space<vmem>>, vector<128x128xbf16>,
    } else {
    }
    return
  }
  func.func @transform_0(%arg0: i32, %arg1: i32) -> (i32, i32) {
    %c0_i32 = arith.constant 0 : i32
    return %arg0, %arg1 : i32, i32
  }
  func.func @transform_1(%arg0: i32, %arg1: i32) -> (i32, i32) {
    %c0_i32 = arith.constant 0 : i32
    %c0_i32_0 = arith.constant 0 : i32
    %c0_i32_1 = arith.constant 0 : i32
    return %c0_i32, %c0_i32_0 : i32, i32
  }
  func.func @transform_2(%arg0: i32, %arg1: i32) -> (i32, i32) {
    %c0_i32 = arith.constant 0 : i32
    %c0_i32_0 = arith.constant 0 : i32
    return %arg0, %c0_i32 : i32, i32
  }
}

module attributes {stable_mosaic.version = 11 : i64} {
  func.func @kernel(%arg0: i32, %arg1: i32, %arg2: memref<128x256xbf16, #tpu.memory_space<vmem>>, %arg3: memref<256x128xbf16, #tpu.memory_space<vmem>>, %arg4: memref<128x128xf32, #tpu.memory_space<vmem>>, %arg5: memref<128x128xf32, #tpu.memory_space<vmem>>) attributes {dimension_semantics = [#tpu.dimension_semantics<parallel>, #tpu.dimension_semantics<arbitrary>], iteration_bounds = array<i64: 2, 1>, scalar_prefetch = 0 : i64, scratch_operands = 1 : i64, tpu.core_type = #tpu.core_type<tc>, window_params = [{transform_indices = @transform_0, window_bounds = array<i64: 128, 256>}, {pipeline_mode = #tpu.pipeline_mode<synchronous>, transform_indices = @transform_1, window_bounds = array<i64: 256, 128>}, {transform_indices = @transform_2, window_bounds = array<i64: 128, 128>}]} {
    %c0_i32 = arith.constant 0 : i32
    %0 = arith.cmpi eq, %arg1, %c0_i32 : i32
    %1 = arith.extui %0 : i1 to i32
    %c0_i32_0 = arith.constant 0 : i32
    %2 = arith.cmpi ne, %1, %c0_i32_0 : i32
    scf.if %2 {
      %cst_9 = arith.constant 0.000000e+00 : f32
      %15 = vector.broadcast %cst_9 : f32 to vector<128x128xf32>
      %c0_10 = arith.constant 0 : index
      %c0_11 = arith.constant 0 : index
      %16 = vector.load %arg5[%c0_10, %c0_11] : memref<128x128xf32, #tpu.memory_space<vmem>>, vector<128x128xf32>
      tpu.vector_store %arg5[%c0_10, %c0_11], %15 {strides = array<i32>} : memref<128x128xf32, #tpu.memory_space<vmem>>, vector<128x128xf32>,
    } else {
    }
    %c256_i32 = arith.constant 256 : i32
    %3 = arith.muli %arg1, %c256_i32 : i32
    %4 = tpu.assume_multiple %3, 128 : i32
    %c0 = arith.constant 0 : index
    %c0_1 = arith.constant 0 : index
    %5 = vector.load %arg5[%c0, %c0_1] : memref<128x128xf32, #tpu.memory_space<vmem>>, vector<128x128xf32>
    %c0_2 = arith.constant 0 : index
    %c0_3 = arith.constant 0 : index
    %6 = vector.load %arg2[%c0_2, %c0_3] : memref<128x256xbf16, #tpu.memory_space<vmem>>, vector<128x256xbf16>
    %7 = arith.index_cast %4 : i32 to index
    %c0_4 = arith.constant 0 : index
    %8 = vector.load %arg3[%7, %c0_4] : memref<256x128xbf16, #tpu.memory_space<vmem>>, vector<256x128xbf16>
    %cst = arith.constant dense<0.000000e+00> : vector<128x128xf32>
    %9 = tpu.matmul %6, %8, %cst {dimension_numbers = #tpu.dot_dimension_numbers<[1], [0], [0], [1], [0, 0, 1, 1], [], []>} : vector<128x256xbf16>, vector<256x128xbf16>, vector<128x128xf32> -> vector<128x128xf32>
    %10 = arith.addf %5, %9 : vector<128x128xf32>
    %c0_5 = arith.constant 0 : index
    %c0_6 = arith.constant 0 : index
    %11 = vector.load %arg5[%c0_5, %c0_6] : memref<128x128xf32, #tpu.memory_space<vmem>>, vector<128x128xf32>
    tpu.vector_store %arg5[%c0_5, %c0_6], %10 {strides = array<i32>} : memref<128x128xf32, #tpu.memory_space<vmem>>, vector<128x128xf32>,
    %c0_i32_7 = arith.constant 0 : i32
    %12 = arith.cmpi eq, %arg1, %c0_i32_7 : i32
    %13 = arith.extui %12 : i1 to i32
    %c0_i32_8 = arith.constant 0 : i32
    %14 = arith.cmpi ne, %13, %c0_i32_8 : i32
    scf.if %14 {
      %c0_9 = arith.constant 0 : index
      %c0_10 = arith.constant 0 : index
      %15 = vector.load %arg5[%c0_9, %c0_10] : memref<128x128xf32, #tpu.memory_space<vmem>>, vector<128x128xf32>
      %c0_11 = arith.constant 0 : index
      %c0_12 = arith.constant 0 : index
      %16 = vector.load %arg4[%c0_11, %c0_12] : memref<128x128xf32, #tpu.memory_space<vmem>>, vector<128x128xf32>
      tpu.vector_store %arg4[%c0_11, %c0_12], %15 {strides = array<i32>} : memref<128x128xf32, #tpu.memory_space<vmem>>, vector<128x128xf32>,
    } else {
    }
    return
  }
  func.func @transform_0(%arg0: i32, %arg1: i32) -> (i32, i32) {
    %c0_i32 = arith.constant 0 : i32
    return %arg0, %arg1 : i32, i32
  }
  func.func @transform_1(%arg0: i32, %arg1: i32) -> (i32, i32) {
    %c0_i32 = arith.constant 0 : i32
    %c0_i32_0 = arith.constant 0 : i32
    %c0_i32_1 = arith.constant 0 : i32
    return %c0_i32, %c0_i32_0 : i32, i32
  }
  func.func @transform_2(%arg0: i32, %arg1: i32) -> (i32, i32) {
    %c0_i32 = arith.constant 0 : i32
    %c0_i32_0 = arith.constant 0 : i32
    return %arg0, %c0_i32 : i32, i32
  }
}

module attributes {stable_mosaic.version = 11 : i64} {
  func.func @_xw_kernel(%arg0: i32, %arg1: memref<256x256xbf16, #tpu.memory_space<vmem>>, %arg2: memref<256x128xbf16, #tpu.memory_space<vmem>>, %arg3: memref<256x128xbf16, #tpu.memory_space<vmem>>) attributes {dimension_semantics = [#tpu.dimension_semantics<parallel>], iteration_bounds = array<i64: 1>, scalar_prefetch = 0 : i64, scratch_operands = 0 : i64, tpu.core_type = #tpu.core_type<tc>, window_params = [{transform_indices = @transform_0, window_bounds = array<i64: 256, 256>}, {pipeline_mode = #tpu.pipeline_mode<synchronous>, transform_indices = @transform_1, window_bounds = array<i64: 256, 128>}, {transform_indices = @transform_2, window_bounds = array<i64: 256, 128>}]} {
    %c0 = arith.constant 0 : index
    %c0_0 = arith.constant 0 : index
    %0 = vector.load %arg1[%c0, %c0_0] : memref<256x256xbf16, #tpu.memory_space<vmem>>, vector<256x256xbf16>
    %c0_1 = arith.constant 0 : index
    %c0_2 = arith.constant 0 : index
    %1 = vector.load %arg2[%c0_1, %c0_2] : memref<256x128xbf16, #tpu.memory_space<vmem>>, vector<256x128xbf16>
    %cst = arith.constant dense<0.000000e+00> : vector<256x128xf32>
    %2 = tpu.matmul %0, %1, %cst {dimension_numbers = #tpu.dot_dimension_numbers<[1], [0], [0], [1], [0, 0, 1, 1], [], []>} : vector<256x256xbf16>, vector<256x128xbf16>, vector<256x128xf32> -> vector<256x128xf32>
    %3 = arith.truncf %2 : vector<256x128xf32> to vector<256x128xbf16>
    %c0_3 = arith.constant 0 : index
    %c0_4 = arith.constant 0 : index
    %4 = vector.load %arg3[%c0_3, %c0_4] : memref<256x128xbf16, #tpu.memory_space<vmem>>, vector<256x128xbf16>
    tpu.vector_store %arg3[%c0_3, %c0_4], %3 {strides = array<i32>} : memref<256x128xbf16, #tpu.memory_space<vmem>>, vector<256x128xbf16>,
    return
  }
  func.func @transform_0(%arg0: i32) -> (i32, i32) {
    %c0_i32 = arith.constant 0 : i32
    %c0_i32_0 = arith.constant 0 : i32
    return %arg0, %c0_i32 : i32, i32
  }
  func.func @transform_1(%arg0: i32) -> (i32, i32) {
    %c0_i32 = arith.constant 0 : i32
    %c0_i32_0 = arith.constant 0 : i32
    %c0_i32_1 = arith.constant 0 : i32
    return %c0_i32, %c0_i32_0 : i32, i32
  }
  func.func @transform_2(%arg0: i32) -> (i32, i32) {
    %c0_i32 = arith.constant 0 : i32
    %c0_i32_0 = arith.constant 0 : i32
    return %arg0, %c0_i32 : i32, i32
  }
}

</mosaic_0001>

<bundles_post_ra>
// kernel: gcn_forward.9
= control target key start
LH: loop header
LB: loop body
LE: loop exit
PB: predicated region body
PF: predicated region fallthrough
CT: control target
= control target key end

     0   :  { %s1068_s9 = smov 0   ;;  %s1070_s10 = smov 0   ;;  %s1181_s0 = inlined_call_operand.vmem [shape: bf16[256,256], index: 0, kind: input, shape index: {}]   ;;  %s1182_s1 = inlined_call_operand.vmem [shape: bf16[256,128], index: 1, kind: input, shape index: {}]   ;;  %s1183_s2 = inlined_call_operand.vmem [shape: bf16[256,128], index: 2, kind: output, shape index: {}]  }
   0x1   :  { %s1072_s11 = smov 0  }
   0x2 LB: > { %s24_s12 = sadd.s32 1, %s1047_s10  ;;  %p765_p0 = scmp.ge.s32.totalorder %s1051_s11, 1  ;;  %s1051_s11 = sphi %s1072_s11, %s12_s11   ;;  %s1047_s10 = sphi %s1070_s10, %s1185_s10   ;;  %s1043_s9 = sphi %s1068_s9, %s1184_s9  }
   0x3   : > { %p26_p1 = scmp.ge.s32.totalorder %s24_s12, 2  ;;  %p133_p2 = scmp.lt.s32.totalorder %s1051_s11, 3 }
   0x5   : > { %s1187_s12 = smov (%p26_p1, %s24_s12), 0  ;;  %p134_p3 = pnand %p765_p0, %p133_p2 }
   0x6   : > { %s766_s15 = sshll.u32 (!%p134_p3), %s1043_s9, 4 }
   0x7   : > { %137 = sbr.rel (%p134_p3) target bundleno = 275 (0x113), region = 28  ;;  %p162_p4 = scmp.lt.s32.totalorder (!%p134_p3), %s766_s15, 31 }
   0xc   : > { %v989_v0 = vld [vmem:[%s1182_s1 + $0x78] sm:$0xff]   ;;  %v991_v2 = vld [vmem:[%s1182_s1 + $0x70] sm:$0xff]   ;;  %v993_v4 = vld [vmem:[%s1182_s1 + $0x68] sm:$0xff]   ;;  %s1189_s15 = smov (!%p162_p4, %s766_s15), 31 }
   0xd   : > { %v990_v1 = vld [vmem:[%s1182_s1 + $0x38] sm:$0xff]   ;;  %885 = vmatprep.subr.bf16.mxu0 %v989_v0  ;;  %949 = vmatprep.subr.bf16.mxu1 %v989_v0  ;;  %v992_v3 = vld [vmem:[%s1182_s1 + $0x30] sm:$0xff]   ;;  %v994_v5 = vld [vmem:[%s1182_s1 + $0x28] sm:$0xff]   ;;  %s821_s30 = sshll.u32 %s1189_s15, 3  ;;  %s770_s26 = sshll.u32 %s1189_s15, 2 }
   0xe   : > { %886 = vmatpush3.bf16.msra.mxu0 %v990_v1  ;;  %957 = vmatpush3.bf16.msra.mxu1 %v990_v1  ;;  %v995_v6 = vld [vmem:[%s1182_s1 + $0x60] sm:$0xff]   ;;  %v997_v8 = vld [vmem:[%s1182_s1 + $0x58] sm:$0xff]   ;;  %s1119_s7 = scalar_lea.vmem %s1181_s0, %s821_s30  ;;  %v999_v10 = vld [vmem:[%s1182_s1 + $0x50] sm:$0xff]   ;;  %s1162_s29 = scalar_lea.vmem %s1183_s2, %s770_s26 }
   0xf   : > { %887 = vmatprep.subr.bf16.mxu0 %v991_v2  ;;  %950 = vmatprep.subr.bf16.mxu1 %v991_v2  ;;  %v996_v7 = vld [vmem:[%s1182_s1 + $0x20] sm:$0xff]   ;;  %v998_v9 = vld [vmem:[%s1182_s1 + $0x18] sm:$0xff]   ;;  %v1000_v13 = vld [vmem:[%s1182_s1 + $0x10] sm:$0xff]  }
  0x10   : > { %v1007_v11 = vld [vmem:[%s1119_s7 + $0x4] ss:$8 sps:$4 sm:$0xff]   ;;  %v1005_v18 = vld [vmem:[%s1119_s7] ss:$8 sps:$4 sm:$0xff]   ;;  %v1011_v20 = vld [vmem:[%s1119_s7 + $0x14] ss:$8 sps:$4 sm:$0xff]  }
  0x11   : > { %v1010_v12 = vld [vmem:[%s1119_s7 + $0x44] ss:$8 sps:$4 sm:$0xff]   ;;  %476 = vmatprep.mubr.bf16.mxu0 %v1007_v11  ;;  %v1008_v19 = vld [vmem:[%s1119_s7 + $0x40] ss:$8 sps:$4 sm:$0xff]   ;;  %v1013_v21 = vld [vmem:[%s1119_s7 + $0x54] ss:$8 sps:$4 sm:$0xff]  }
  0x12   : > { %888 = vmatpush3.bf16.msra.mxu0 %v992_v3  ;;  %958 = vmatpush3.bf16.msra.mxu1 %v992_v3  ;;  %v1001_v14 = vld [vmem:[%s1182_s1 + $0x48] sm:$0xff]   ;;  %v1003_v16 = vld [vmem:[%s1182_s1 + $0x40] sm:$0xff]   ;;  %v1015_v22 = vld [vmem:[%s1119_s7 + $0x10] ss:$8 sps:$4 sm:$0xff]  }
  0x13   : > { %889 = vmatprep.subr.bf16.mxu0 %v993_v4  ;;  %951 = vmatprep.subr.bf16.mxu1 %v993_v4  ;;  %v1002_v15 = vld [vmem:[%s1182_s1 + $0x8] sm:$0xff]   ;;  %v1004_v17 = vld [vmem:[%s1182_s1] sm:$0xff]   ;;  %v1016_v23 = vld [vmem:[%s1119_s7 + $0x50] ss:$8 sps:$4 sm:$0xff]  }
  0x14   : > { %508 = vmatprep.mubr.bf16.mxu1 %v1010_v12  ;;  %v1017_v24 = vld [vmem:[%s1119_s7 + $0x24] ss:$8 sps:$4 sm:$0xff]   ;;  %v1021_v26 = vld [vmem:[%s1119_s7 + $0x20] ss:$8 sps:$4 sm:$0xff]   ;;  %v1023_v28 = vld [vmem:[%s1119_s7 + $0x34] ss:$8 sps:$4 sm:$0xff]  }
  0x15   : > { %v1019_v25 = vld [vmem:[%s1119_s7 + $0x64] ss:$8 sps:$4 sm:$0xff]   ;;  %v1022_v27 = vld [vmem:[%s1119_s7 + $0x60] ss:$8 sps:$4 sm:$0xff]   ;;  %v1025_v29 = vld [vmem:[%s1119_s7 + $0x74] ss:$8 sps:$4 sm:$0xff]  }
  0x16   : > { %890 = vmatpush3.bf16.msra.mxu0 %v994_v5  ;;  %959 = vmatpush3.bf16.msra.mxu1 %v994_v5  ;;  %v1027_v30 = vld [vmem:[%s1119_s7 + $0x30] ss:$8 sps:$4 sm:$0xff]  }
  0x17   : > { %891 = vmatprep.subr.bf16.mxu0 %v995_v6  ;;  %952 = vmatprep.subr.bf16.mxu1 %v995_v6  ;;  %v1028_v31 = vld [vmem:[%s1119_s7 + $0x70] ss:$8 sps:$4 sm:$0xff]  }
  0x1a   : > { %892 = vmatpush3.bf16.msra.mxu0 %v996_v7  ;;  %960 = vmatpush3.bf16.msra.mxu1 %v996_v7 }
  0x1b   : > { %893 = vmatprep.subr.bf16.mxu0 %v997_v8  ;;  %953 = vmatprep.subr.bf16.mxu1 %v997_v8 }
  0x1e   : > { %894 = vmatpush3.bf16.msra.mxu0 %v998_v9  ;;  %961 = vmatpush3.bf16.msra.mxu1 %v998_v9 }
  0x1f   : > { %895 = vmatprep.subr.bf16.mxu0 %v999_v10  ;;  %954 = vmatprep.subr.bf16.mxu1 %v999_v10 }
  0x22   : > { %896 = vmatpush3.bf16.msra.mxu0 %v1000_v13  ;;  %962 = vmatpush3.bf16.msra.mxu1 %v1000_v13 }
  0x23   : > { %897 = vmatprep.subr.bf16.mxu0 %v1001_v14  ;;  %955 = vmatprep.subr.bf16.mxu1 %v1001_v14 }
  0x26   : > { %898 = vmatpush3.bf16.msra.mxu0 %v1002_v15  ;;  %963 = vmatpush3.bf16.msra.mxu1 %v1002_v15 }
  0x27   : > { %899 = vmatprep.subr.bf16.mxu0 %v1003_v16  ;;  %956 = vmatprep.subr.bf16.mxu1 %v1003_v16 }
  0x2a   : > { %900 = vmatpush3.bf16.msra.mxu0 %v1004_v17  ;;  %964 = vmatpush3.bf16.msra.mxu1 %v1004_v17 }
  0x2d   : > { %477 = vmatmul.mubr.bf16.vlgmr.msra.gmra.mxu0 %v1005_v18  ;;  %509 = vmatmul.mubr.bf16.vlgmr.msra.gmra.mxu1 %v1008_v19 }
  0x2e   : > { %484 = vmatprep.mubr.bf16.mxu0 %v1011_v20  ;;  %516 = vmatprep.mubr.bf16.mxu1 %v1013_v21 }
  0x35   : > { %485 = vmatmul.mubr.bf16.gmra.mxu0 %v1015_v22  ;;  %517 = vmatmul.mubr.bf16.gmra.mxu1 %v1016_v23 }
  0x36   : > { %492 = vmatprep.mubr.bf16.mxu0 %v1017_v24  ;;  %524 = vmatprep.mubr.bf16.mxu1 %v1019_v25 }
  0x3d   : > { %493 = vmatmul.mubr.bf16.gmra.mxu0 %v1021_v26  ;;  %525 = vmatmul.mubr.bf16.gmra.mxu1 %v1022_v27 }
  0x3e   : > { %500 = vmatprep.mubr.bf16.mxu0 %v1023_v28  ;;  %532 = vmatprep.mubr.bf16.mxu1 %v1025_v29 }
  0x45   : > { %501 = vmatmul.mubr.bf16.gmra.mxu0 %v1027_v30  ;;  %533 = vmatmul.mubr.bf16.gmra.mxu1 %v1028_v31 }
  0xed   : > { %v901_v32 = vpop.f32.mrf.mxu0  ;;  %v925_v33 = vpop.f32.mrf.mxu1 }
  0xef   : > { %v902_v34 = vpop.f32.mrf.mxu0  ;;  %v926_v35 = vpop.f32.mrf.mxu1 }
  0xf0   : > { %v903_v38 = vadd.f32 %v902_v34, %v901_v32  ;;  %v927_v39 = vadd.f32 %v926_v35, %v925_v33 }
  0xf1   : > { %v904_v36 = vpop.f32.mrf.mxu0  ;;  %v928_v37 = vpop.f32.mrf.mxu1 }
  0xf2   : > { %v592_v46 = vmax.f32 %v903_v38, 0.0  ;;  %v600_v47 = vmax.f32 %v927_v39, 0.0 }
  0xf3   : > { %v905_v40 = vpop.f32.mrf.mxu0  ;;  %v929_v41 = vpop.f32.mrf.mxu1 }
  0xf4   : > { %v906_v42 = vadd.f32 %v905_v40, %v904_v36  ;;  %v930_v43 = vadd.f32 %v929_v41, %v928_v37 }
  0xf5   : > { %v907_v44 = vpop.f32.mrf.mxu0  ;;  %v931_v45 = vpop.f32.mrf.mxu1 }
  0xf6   : > { %v593_v48 = vmax.f32 %v906_v42, 0.0  ;;  %v601_v49 = vmax.f32 %v930_v43, 0.0 }
  0xf7   : > { %v908_v50 = vpop.f32.mrf.mxu0  ;;  %v932_v51 = vpop.f32.mrf.mxu1 }
  0xf8   : > { %v841_v52 = vpack.c.bf16 %v593_v48, %v592_v46  ;;  %v861_v53 = vpack.c.bf16 %v601_v49, %v600_v47  ;;  %v909_v56 = vadd.f32 %v908_v50, %v907_v44  ;;  %v933_v57 = vadd.f32 %v932_v51, %v931_v45 }
  0xf9   : > { %v910_v54 = vpop.f32.mrf.mxu0  ;;  %v934_v55 = vpop.f32.mrf.mxu1 }
  0xfa   : > { %842 = vst [vmem:[%s1162_s29] sm:$0xff] %v841_v52   ;;  %881 = vst [vmem:[%s1162_s29 + $0x20] sm:$0xff] %v861_v53   ;;  %v594_v0 = vmax.f32 %v909_v56, 0.0  ;;  %v602_v1 = vmax.f32 %v933_v57, 0.0 }
  0xfb   : > { %v911_v58 = vpop.f32.mrf.mxu0  ;;  %v935_v59 = vpop.f32.mrf.mxu1 }
  0xfc   : > { %v912_v60 = vadd.f32 %v911_v58, %v910_v54  ;;  %v936_v61 = vadd.f32 %v935_v59, %v934_v55 }
  0xfd   : > { %v913_v62 = vpop.f32.mrf.mxu0  ;;  %v937_v63 = vpop.f32.mrf.mxu1 }
  0xfe   : > { %v595_v2 = vmax.f32 %v912_v60, 0.0  ;;  %v603_v3 = vmax.f32 %v936_v61, 0.0 }
  0xff   : > { %v914_v4 = vpop.f32.mrf.mxu0  ;;  %v938_v5 = vpop.f32.mrf.mxu1 }
 0x100   : > { %v846_v6 = vpack.c.bf16 %v595_v2, %v594_v0  ;;  %v866_v7 = vpack.c.bf16 %v603_v3, %v602_v1  ;;  %v915_v10 = vadd.f32 %v914_v4, %v913_v62  ;;  %v939_v11 = vadd.f32 %v938_v5, %v937_v63 }
 0x101   : > { %v916_v8 = vpop.f32.mrf.mxu0  ;;  %v940_v9 = vpop.f32.mrf.mxu1 }
 0x102   : > { %878 = vst [vmem:[%s1162_s29 + $0x8] sm:$0xff] %v846_v6   ;;  %882 = vst [vmem:[%s1162_s29 + $0x28] sm:$0xff] %v866_v7   ;;  %v596_v18 = vmax.f32 %v915_v10, 0.0  ;;  %v604_v19 = vmax.f32 %v939_v11, 0.0 }
 0x103   : > { %v917_v12 = vpop.f32.mrf.mxu0  ;;  %v941_v13 = vpop.f32.mrf.mxu1 }
 0x104   : > { %v918_v14 = vadd.f32 %v917_v12, %v916_v8  ;;  %v942_v15 = vadd.f32 %v941_v13, %v940_v9 }
 0x105   : > { %v919_v16 = vpop.f32.mrf.mxu0  ;;  %v943_v17 = vpop.f32.mrf.mxu1 }
 0x106   : > { %v597_v20 = vmax.f32 %v918_v14, 0.0  ;;  %v605_v21 = vmax.f32 %v942_v15, 0.0 }
 0x107   : > { %v920_v22 = vpop.f32.mrf.mxu0  ;;  %v944_v23 = vpop.f32.mrf.mxu1 }
 0x108   : > { %v851_v24 = vpack.c.bf16 %v597_v20, %v596_v18  ;;  %v871_v25 = vpack.c.bf16 %v605_v21, %v604_v19  ;;  %v921_v28 = vadd.f32 %v920_v22, %v919_v16  ;;  %v945_v29 = vadd.f32 %v944_v23, %v943_v17 }
 0x109   : > { %v922_v26 = vpop.f32.mrf.mxu0  ;;  %v946_v27 = vpop.f32.mrf.mxu1 }
 0x10a   : > { %879 = vst [vmem:[%s1162_s29 + $0x10] sm:$0xff] %v851_v24   ;;  %883 = vst [vmem:[%s1162_s29 + $0x30] sm:$0xff] %v871_v25   ;;  %v598_v34 = vmax.f32 %v921_v28, 0.0  ;;  %v606_v35 = vmax.f32 %v945_v29, 0.0 }
 0x10b   : > { %v923_v30 = vpop.f32.mrf.mxu0  ;;  %v947_v31 = vpop.f32.mrf.mxu1 }
 0x10c   : > { %v924_v32 = vadd.f32 %v923_v30, %v922_v26  ;;  %v948_v33 = vadd.f32 %v947_v31, %v946_v27 }
 0x10e   : > { %v599_v36 = vmax.f32 %v924_v32, 0.0  ;;  %v607_v37 = vmax.f32 %v948_v33, 0.0 }
 0x110   : > { %v856_v38 = vpack.c.bf16 %v599_v36, %v598_v34  ;;  %v876_v39 = vpack.c.bf16 %v607_v37, %v606_v35 }
 0x112   : > { %880 = vst [vmem:[%s1162_s29 + $0x18] sm:$0xff] %v856_v38   ;;  %884 = vst [vmem:[%s1162_s29 + $0x38] sm:$0xff] %v876_v39  }
 0x113 PF: > { %s12_s11 = sadd.s32 1, %s1051_s11   ;;  %s1184_s9 = smov %s1047_s10 }
 0x114   : > { %p9_p5 = scmp.ge.s32.totalorder %s12_s11, 4   ;;  %s1185_s10 = smov %s1187_s12 }
 0x116   :  { %11 = sbr.rel (!%p9_p5) target bundleno = 2 (0x2), region = 67 }

// kernel: gcn_forward.8
= control target key start
LH: loop header
LB: loop body
LE: loop exit
PB: predicated region body
PF: predicated region fallthrough
CT: control target
= control target key end

     0   :  { %s959_s1 = inlined_call_operand.vmem [shape: bf16[128,128], index: 1, kind: input, shape index: {}]   ;;  %s960_s0 = inlined_call_operand.vmem [shape: bf16[256,128], index: 0, kind: input, shape index: {}]   ;;  %s961_s2 = inlined_call_operand.vmem [shape: bf16[256,128], index: 2, kind: output, shape index: {}]  }
   0x1   :  { %v800_v0 = vld [vmem:[%s959_s1 + $0x38] sm:$0xff]   ;;  %v801_v1 = vld [vmem:[%s959_s1 + $0x30] sm:$0xff]   ;;  %v802_v2 = vld [vmem:[%s959_s1 + $0x28] sm:$0xff]  }
   0x2   :  { %736 = vmatprep.subr.bf16.mxu0 %v800_v0  ;;  %784 = vmatprep.subr.bf16.mxu1 %v800_v0  ;;  %v803_v3 = vld [vmem:[%s959_s1 + $0x20] sm:$0xff]   ;;  %v804_v6 = vld [vmem:[%s959_s1 + $0x18] sm:$0xff]   ;;  %v805_v7 = vld [vmem:[%s959_s1 + $0x10] sm:$0xff]  }
   0x3   :  { %737 = vmatpush3.bf16.msra.mxu0 %v800_v0  ;;  %792 = vmatpush3.bf16.msra.mxu1 %v800_v0  ;;  %v808_v4 = vld [vmem:[%s960_s0] sm:$0xff]   ;;  %v806_v8 = vld [vmem:[%s959_s1 + $0x8] sm:$0xff]   ;;  %v812_v12 = vld [vmem:[%s960_s0 + $0x10] sm:$0xff]  }
   0x4   :  { %738 = vmatprep.subr.bf16.mxu0 %v801_v1  ;;  %785 = vmatprep.subr.bf16.mxu1 %v801_v1  ;;  %v809_v5 = vld [vmem:[%s960_s0 + $0x40] sm:$0xff]   ;;  %v810_v10 = vld [vmem:[%s960_s0 + $0x8] sm:$0xff]   ;;  %v813_v13 = vld [vmem:[%s960_s0 + $0x50] sm:$0xff]  }
   0x5   :  { %752 = vmatprep.mubr.bf16.mxu0 %v808_v4  ;;  %768 = vmatprep.mubr.bf16.mxu1 %v809_v5  ;;  %v807_v9 = vld [vmem:[%s959_s1] sm:$0xff]   ;;  %v811_v11 = vld [vmem:[%s960_s0 + $0x48] sm:$0xff]   ;;  %v814_v14 = vld [vmem:[%s960_s0 + $0x18] sm:$0xff]  }
   0x6   :  { %v815_v15 = vld [vmem:[%s960_s0 + $0x58] sm:$0xff]   ;;  %v816_v16 = vld [vmem:[%s960_s0 + $0x20] sm:$0xff]   ;;  %v818_v18 = vld [vmem:[%s960_s0 + $0x28] sm:$0xff]  }
   0x7   :  { %739 = vmatpush3.bf16.msra.mxu0 %v801_v1  ;;  %793 = vmatpush3.bf16.msra.mxu1 %v801_v1  ;;  %v817_v17 = vld [vmem:[%s960_s0 + $0x60] sm:$0xff]   ;;  %v819_v19 = vld [vmem:[%s960_s0 + $0x68] sm:$0xff]   ;;  %v820_v20 = vld [vmem:[%s960_s0 + $0x30] sm:$0xff]  }
   0x8   :  { %740 = vmatprep.subr.bf16.mxu0 %v802_v2  ;;  %786 = vmatprep.subr.bf16.mxu1 %v802_v2  ;;  %v821_v21 = vld [vmem:[%s960_s0 + $0x70] sm:$0xff]   ;;  %v822_v22 = vld [vmem:[%s960_s0 + $0x38] sm:$0xff]  }
   0x9   :  { %v823_v23 = vld [vmem:[%s960_s0 + $0x78] sm:$0xff]  }
   0xb   :  { %741 = vmatpush3.bf16.msra.mxu0 %v802_v2  ;;  %794 = vmatpush3.bf16.msra.mxu1 %v802_v2 }
   0xc   :  { %742 = vmatprep.subr.bf16.mxu0 %v803_v3  ;;  %787 = vmatprep.subr.bf16.mxu1 %v803_v3 }
   0xf   :  { %743 = vmatpush3.bf16.msra.mxu0 %v803_v3  ;;  %795 = vmatpush3.bf16.msra.mxu1 %v803_v3 }
  0x10   :  { %744 = vmatprep.subr.bf16.mxu0 %v804_v6  ;;  %788 = vmatprep.subr.bf16.mxu1 %v804_v6 }
  0x13   :  { %745 = vmatpush3.bf16.msra.mxu0 %v804_v6  ;;  %796 = vmatpush3.bf16.msra.mxu1 %v804_v6 }
  0x14   :  { %746 = vmatprep.subr.bf16.mxu0 %v805_v7  ;;  %789 = vmatprep.subr.bf16.mxu1 %v805_v7 }
  0x17   :  { %747 = vmatpush3.bf16.msra.mxu0 %v805_v7  ;;  %797 = vmatpush3.bf16.msra.mxu1 %v805_v7 }
  0x18   :  { %748 = vmatprep.subr.bf16.mxu0 %v806_v8  ;;  %790 = vmatprep.subr.bf16.mxu1 %v806_v8 }
  0x1b   :  { %749 = vmatpush3.bf16.msra.mxu0 %v806_v8  ;;  %798 = vmatpush3.bf16.msra.mxu1 %v806_v8 }
  0x1c   :  { %750 = vmatprep.subr.bf16.mxu0 %v807_v9  ;;  %791 = vmatprep.subr.bf16.mxu1 %v807_v9 }
  0x1f   :  { %751 = vmatpush3.bf16.msra.mxu0 %v807_v9  ;;  %799 = vmatpush3.bf16.msra.mxu1 %v807_v9 }
  0x22   :  { %753 = vmatmul.mubr.bf16.vlgmr.msra.gmra.mxu0 %v810_v10  ;;  %769 = vmatmul.mubr.bf16.vlgmr.msra.gmra.mxu1 %v811_v11 }
  0x23   :  { %756 = vmatprep.mubr.bf16.mxu0 %v812_v12  ;;  %772 = vmatprep.mubr.bf16.mxu1 %v813_v13 }
  0x2a   :  { %757 = vmatmul.mubr.bf16.gmra.mxu0 %v814_v14  ;;  %773 = vmatmul.mubr.bf16.gmra.mxu1 %v815_v15 }
  0x2b   :  { %760 = vmatprep.mubr.bf16.mxu0 %v816_v16  ;;  %776 = vmatprep.mubr.bf16.mxu1 %v817_v17 }
  0x32   :  { %761 = vmatmul.mubr.bf16.gmra.mxu0 %v818_v18  ;;  %777 = vmatmul.mubr.bf16.gmra.mxu1 %v819_v19 }
  0x33   :  { %764 = vmatprep.mubr.bf16.mxu0 %v820_v20  ;;  %780 = vmatprep.mubr.bf16.mxu1 %v821_v21 }
  0x3a   :  { %765 = vmatmul.mubr.bf16.gmra.mxu0 %v822_v22  ;;  %781 = vmatmul.mubr.bf16.gmra.mxu1 %v823_v23 }
  0xe2   :  { %v754_v24 = vpop.f32.mrf.mxu0  ;;  %v770_v25 = vpop.f32.mrf.mxu1 }
  0xe4   :  { %v238_v26 = vpop.f32.mrf.mxu0  ;;  %v302_v27 = vpop.f32.mrf.mxu1 }
  0xe6   :  { %v755_v28 = vpop.f32.mrf.mxu0  ;;  %v771_v29 = vpop.f32.mrf.mxu1 }
  0xe7   :  { %v625_v30 = vpack.c.bf16 %v755_v28, %v754_v24  ;;  %v665_v31 = vpack.c.bf16 %v771_v29, %v770_v25 }
  0xe8   :  { %v241_v32 = vpop.f32.mrf.mxu0  ;;  %v305_v33 = vpop.f32.mrf.mxu1 }
  0xe9   :  { %697 = vst [vmem:[%s961_s2 + $0x8] sm:$0xff] %v625_v30   ;;  %705 = vst [vmem:[%s961_s2 + $0x48] sm:$0xff] %v665_v31   ;;  %v620_v34 = vpack.c.bf16 %v241_v32, %v238_v26  ;;  %v660_v35 = vpack.c.bf16 %v305_v33, %v302_v27 }
  0xea   :  { %v758_v36 = vpop.f32.mrf.mxu0  ;;  %v774_v37 = vpop.f32.mrf.mxu1 }
  0xeb   :  { %621 = vst [vmem:[%s961_s2] sm:$0xff] %v620_v34   ;;  %704 = vst [vmem:[%s961_s2 + $0x40] sm:$0xff] %v660_v35  }
  0xec   :  { %v254_v38 = vpop.f32.mrf.mxu0  ;;  %v318_v39 = vpop.f32.mrf.mxu1 }
  0xee   :  { %v759_v40 = vpop.f32.mrf.mxu0  ;;  %v775_v41 = vpop.f32.mrf.mxu1 }
  0xef   :  { %v635_v42 = vpack.c.bf16 %v759_v40, %v758_v36  ;;  %v675_v43 = vpack.c.bf16 %v775_v41, %v774_v37 }
  0xf0   :  { %v257_v44 = vpop.f32.mrf.mxu0  ;;  %v321_v45 = vpop.f32.mrf.mxu1 }
  0xf1   :  { %699 = vst [vmem:[%s961_s2 + $0x18] sm:$0xff] %v635_v42   ;;  %707 = vst [vmem:[%s961_s2 + $0x58] sm:$0xff] %v675_v43   ;;  %v630_v46 = vpack.c.bf16 %v257_v44, %v254_v38  ;;  %v670_v47 = vpack.c.bf16 %v321_v45, %v318_v39 }
  0xf2   :  { %v762_v48 = vpop.f32.mrf.mxu0  ;;  %v778_v49 = vpop.f32.mrf.mxu1 }
  0xf3   :  { %698 = vst [vmem:[%s961_s2 + $0x10] sm:$0xff] %v630_v46   ;;  %706 = vst [vmem:[%s961_s2 + $0x50] sm:$0xff] %v670_v47  }
  0xf4   :  { %v270_v50 = vpop.f32.mrf.mxu0  ;;  %v334_v51 = vpop.f32.mrf.mxu1 }
  0xf6   :  { %v763_v52 = vpop.f32.mrf.mxu0  ;;  %v779_v53 = vpop.f32.mrf.mxu1 }
  0xf7   :  { %v645_v54 = vpack.c.bf16 %v763_v52, %v762_v48  ;;  %v685_v55 = vpack.c.bf16 %v779_v53, %v778_v49 }
  0xf8   :  { %v273_v56 = vpop.f32.mrf.mxu0  ;;  %v337_v57 = vpop.f32.mrf.mxu1 }
  0xf9   :  { %701 = vst [vmem:[%s961_s2 + $0x28] sm:$0xff] %v645_v54   ;;  %709 = vst [vmem:[%s961_s2 + $0x68] sm:$0xff] %v685_v55   ;;  %v640_v58 = vpack.c.bf16 %v273_v56, %v270_v50  ;;  %v680_v59 = vpack.c.bf16 %v337_v57, %v334_v51 }
  0xfa   :  { %v766_v60 = vpop.f32.mrf.mxu0  ;;  %v782_v61 = vpop.f32.mrf.mxu1 }
  0xfb   :  { %700 = vst [vmem:[%s961_s2 + $0x20] sm:$0xff] %v640_v58   ;;  %708 = vst [vmem:[%s961_s2 + $0x60] sm:$0xff] %v680_v59  }
  0xfc   :  { %v286_v62 = vpop.f32.mrf.mxu0  ;;  %v350_v63 = vpop.f32.mrf.mxu1 }
  0xfe   :  { %v767_v0 = vpop.f32.mrf.mxu0  ;;  %v783_v1 = vpop.f32.mrf.mxu1 }
  0xff   :  { %v655_v2 = vpack.c.bf16 %v767_v0, %v766_v60  ;;  %v695_v3 = vpack.c.bf16 %v783_v1, %v782_v61 }
 0x100   :  { %v289_v4 = vpop.f32.mrf.mxu0  ;;  %v353_v5 = vpop.f32.mrf.mxu1 }
 0x101   :  { %703 = vst [vmem:[%s961_s2 + $0x38] sm:$0xff] %v655_v2   ;;  %711 = vst [vmem:[%s961_s2 + $0x78] sm:$0xff] %v695_v3   ;;  %v650_v6 = vpack.c.bf16 %v289_v4, %v286_v62  ;;  %v690_v7 = vpack.c.bf16 %v353_v5, %v350_v63 }
 0x103   :  { %702 = vst [vmem:[%s961_s2 + $0x30] sm:$0xff] %v650_v6   ;;  %710 = vst [vmem:[%s961_s2 + $0x70] sm:$0xff] %v690_v7  }

// kernel: gcn_forward.15
= control target key start
LH: loop header
LB: loop body
LE: loop exit
PB: predicated region body
PF: predicated region fallthrough
CT: control target
= control target key end

     0   :  { %s909_s9 = smov 0   ;;  %s911_s10 = smov 0   ;;  %s1033_s0 = inlined_call_operand.vmem [shape: bf16[256,256], index: 0, kind: input, shape index: {}]   ;;  %s1034_s1 = inlined_call_operand.vmem [shape: bf16[256,128], index: 1, kind: input, shape index: {}]   ;;  %s1035_s2 = inlined_call_operand.vmem [shape: f32[256,128], index: 2, kind: output, shape index: {}]  }
   0x1   :  { %s913_s11 = smov 0  }
   0x2 LB: > { %s24_s12 = sadd.s32 1, %s888_s10  ;;  %p685_p0 = scmp.ge.s32.totalorder %s892_s11, 1  ;;  %s892_s11 = sphi %s913_s11, %s12_s11   ;;  %s888_s10 = sphi %s911_s10, %s1037_s10   ;;  %s884_s9 = sphi %s909_s9, %s1036_s9  }
   0x3   : > { %p26_p1 = scmp.ge.s32.totalorder %s24_s12, 2  ;;  %p133_p2 = scmp.lt.s32.totalorder %s892_s11, 3 }
   0x5   : > { %s1039_s12 = smov (%p26_p1, %s24_s12), 0  ;;  %p134_p3 = pnand %p685_p0, %p133_p2 }
   0x6   : > { %s686_s15 = sshll.u32 (!%p134_p3), %s884_s9, 4 }
   0x7   : > { %137 = sbr.rel (%p134_p3) target bundleno = 271 (0x10f), region = 28  ;;  %p162_p4 = scmp.lt.s32.totalorder (!%p134_p3), %s686_s15, 31 }
   0xc   : > { %v830_v0 = vld [vmem:[%s1034_s1 + $0x78] sm:$0xff]   ;;  %v832_v2 = vld [vmem:[%s1034_s1 + $0x70] sm:$0xff]   ;;  %v834_v4 = vld [vmem:[%s1034_s1 + $0x68] sm:$0xff]   ;;  %s1041_s15 = smov (!%p162_p4, %s686_s15), 31 }
   0xd   : > { %v831_v1 = vld [vmem:[%s1034_s1 + $0x38] sm:$0xff]   ;;  %726 = vmatprep.subr.bf16.mxu0 %v830_v0  ;;  %790 = vmatprep.subr.bf16.mxu1 %v830_v0  ;;  %v833_v3 = vld [vmem:[%s1034_s1 + $0x30] sm:$0xff]   ;;  %v835_v5 = vld [vmem:[%s1034_s1 + $0x28] sm:$0xff]   ;;  %s725_s30 = sshll.u32 %s1041_s15, 3 }
   0xe   : > { %727 = vmatpush3.bf16.msra.mxu0 %v831_v1  ;;  %798 = vmatpush3.bf16.msra.mxu1 %v831_v1  ;;  %v836_v6 = vld [vmem:[%s1034_s1 + $0x60] sm:$0xff]   ;;  %v838_v8 = vld [vmem:[%s1034_s1 + $0x58] sm:$0xff]   ;;  %s962_s7 = scalar_lea.vmem %s1033_s0, %s725_s30  ;;  %v840_v10 = vld [vmem:[%s1034_s1 + $0x50] sm:$0xff]   ;;  %s1006_s28 = scalar_lea.vmem %s1035_s2, %s725_s30 }
   0xf   : > { %728 = vmatprep.subr.bf16.mxu0 %v832_v2  ;;  %791 = vmatprep.subr.bf16.mxu1 %v832_v2  ;;  %v837_v7 = vld [vmem:[%s1034_s1 + $0x20] sm:$0xff]   ;;  %v839_v9 = vld [vmem:[%s1034_s1 + $0x18] sm:$0xff]   ;;  %v841_v13 = vld [vmem:[%s1034_s1 + $0x10] sm:$0xff]  }
  0x10   : > { %v848_v11 = vld [vmem:[%s962_s7 + $0x4] ss:$8 sps:$4 sm:$0xff]   ;;  %v846_v18 = vld [vmem:[%s962_s7] ss:$8 sps:$4 sm:$0xff]   ;;  %v852_v20 = vld [vmem:[%s962_s7 + $0x14] ss:$8 sps:$4 sm:$0xff]  }
  0x11   : > { %v851_v12 = vld [vmem:[%s962_s7 + $0x44] ss:$8 sps:$4 sm:$0xff]   ;;  %476 = vmatprep.mubr.bf16.mxu0 %v848_v11  ;;  %v849_v19 = vld [vmem:[%s962_s7 + $0x40] ss:$8 sps:$4 sm:$0xff]   ;;  %v854_v21 = vld [vmem:[%s962_s7 + $0x54] ss:$8 sps:$4 sm:$0xff]  }
  0x12   : > { %729 = vmatpush3.bf16.msra.mxu0 %v833_v3  ;;  %799 = vmatpush3.bf16.msra.mxu1 %v833_v3  ;;  %v842_v14 = vld [vmem:[%s1034_s1 + $0x48] sm:$0xff]   ;;  %v844_v16 = vld [vmem:[%s1034_s1 + $0x40] sm:$0xff]   ;;  %v856_v22 = vld [vmem:[%s962_s7 + $0x10] ss:$8 sps:$4 sm:$0xff]  }
  0x13   : > { %730 = vmatprep.subr.bf16.mxu0 %v834_v4  ;;  %792 = vmatprep.subr.bf16.mxu1 %v834_v4  ;;  %v843_v15 = vld [vmem:[%s1034_s1 + $0x8] sm:$0xff]   ;;  %v845_v17 = vld [vmem:[%s1034_s1] sm:$0xff]   ;;  %v857_v23 = vld [vmem:[%s962_s7 + $0x50] ss:$8 sps:$4 sm:$0xff]  }
  0x14   : > { %508 = vmatprep.mubr.bf16.mxu1 %v851_v12  ;;  %v858_v24 = vld [vmem:[%s962_s7 + $0x24] ss:$8 sps:$4 sm:$0xff]   ;;  %v862_v26 = vld [vmem:[%s962_s7 + $0x20] ss:$8 sps:$4 sm:$0xff]   ;;  %v864_v28 = vld [vmem:[%s962_s7 + $0x34] ss:$8 sps:$4 sm:$0xff]  }
  0x15   : > { %v860_v25 = vld [vmem:[%s962_s7 + $0x64] ss:$8 sps:$4 sm:$0xff]   ;;  %v863_v27 = vld [vmem:[%s962_s7 + $0x60] ss:$8 sps:$4 sm:$0xff]   ;;  %v866_v29 = vld [vmem:[%s962_s7 + $0x74] ss:$8 sps:$4 sm:$0xff]  }
  0x16   : > { %731 = vmatpush3.bf16.msra.mxu0 %v835_v5  ;;  %800 = vmatpush3.bf16.msra.mxu1 %v835_v5  ;;  %v868_v30 = vld [vmem:[%s962_s7 + $0x30] ss:$8 sps:$4 sm:$0xff]  }
  0x17   : > { %732 = vmatprep.subr.bf16.mxu0 %v836_v6  ;;  %793 = vmatprep.subr.bf16.mxu1 %v836_v6  ;;  %v869_v31 = vld [vmem:[%s962_s7 + $0x70] ss:$8 sps:$4 sm:$0xff]  }
  0x1a   : > { %733 = vmatpush3.bf16.msra.mxu0 %v837_v7  ;;  %801 = vmatpush3.bf16.msra.mxu1 %v837_v7 }
  0x1b   : > { %734 = vmatprep.subr.bf16.mxu0 %v838_v8  ;;  %794 = vmatprep.subr.bf16.mxu1 %v838_v8 }
  0x1e   : > { %735 = vmatpush3.bf16.msra.mxu0 %v839_v9  ;;  %802 = vmatpush3.bf16.msra.mxu1 %v839_v9 }
  0x1f   : > { %736 = vmatprep.subr.bf16.mxu0 %v840_v10  ;;  %795 = vmatprep.subr.bf16.mxu1 %v840_v10 }
  0x22   : > { %737 = vmatpush3.bf16.msra.mxu0 %v841_v13  ;;  %803 = vmatpush3.bf16.msra.mxu1 %v841_v13 }
  0x23   : > { %738 = vmatprep.subr.bf16.mxu0 %v842_v14  ;;  %796 = vmatprep.subr.bf16.mxu1 %v842_v14 }
  0x26   : > { %739 = vmatpush3.bf16.msra.mxu0 %v843_v15  ;;  %804 = vmatpush3.bf16.msra.mxu1 %v843_v15 }
  0x27   : > { %740 = vmatprep.subr.bf16.mxu0 %v844_v16  ;;  %797 = vmatprep.subr.bf16.mxu1 %v844_v16 }
  0x2a   : > { %741 = vmatpush3.bf16.msra.mxu0 %v845_v17  ;;  %805 = vmatpush3.bf16.msra.mxu1 %v845_v17 }
  0x2d   : > { %477 = vmatmul.mubr.bf16.vlgmr.msra.gmra.mxu0 %v846_v18  ;;  %509 = vmatmul.mubr.bf16.vlgmr.msra.gmra.mxu1 %v849_v19 }
  0x2e   : > { %484 = vmatprep.mubr.bf16.mxu0 %v852_v20  ;;  %516 = vmatprep.mubr.bf16.mxu1 %v854_v21 }
  0x35   : > { %485 = vmatmul.mubr.bf16.gmra.mxu0 %v856_v22  ;;  %517 = vmatmul.mubr.bf16.gmra.mxu1 %v857_v23 }
  0x36   : > { %492 = vmatprep.mubr.bf16.mxu0 %v858_v24  ;;  %524 = vmatprep.mubr.bf16.mxu1 %v860_v25 }
  0x3d   : > { %493 = vmatmul.mubr.bf16.gmra.mxu0 %v862_v26  ;;  %525 = vmatmul.mubr.bf16.gmra.mxu1 %v863_v27 }
  0x3e   : > { %500 = vmatprep.mubr.bf16.mxu0 %v864_v28  ;;  %532 = vmatprep.mubr.bf16.mxu1 %v866_v29 }
  0x45   : > { %501 = vmatmul.mubr.bf16.gmra.mxu0 %v868_v30  ;;  %533 = vmatmul.mubr.bf16.gmra.mxu1 %v869_v31 }
  0xed   : > { %v742_v32 = vpop.f32.mrf.mxu0  ;;  %v766_v33 = vpop.f32.mrf.mxu1 }
  0xef   : > { %v743_v34 = vpop.f32.mrf.mxu0  ;;  %v767_v35 = vpop.f32.mrf.mxu1 }
  0xf0   : > { %v744_v36 = vadd.f32 %v743_v34, %v742_v32  ;;  %v768_v37 = vadd.f32 %v767_v35, %v766_v33 }
  0xf1   : > { %v745_v38 = vpop.f32.mrf.mxu0  ;;  %v769_v39 = vpop.f32.mrf.mxu1 }
  0xf2   : > { %592 = vst [vmem:[%s1006_s28] sm:$0xff] %v744_v36  ;;  %600 = vst [vmem:[%s1006_s28 + $0x40] sm:$0xff] %v768_v37 }
  0xf3   : > { %v746_v40 = vpop.f32.mrf.mxu0  ;;  %v770_v41 = vpop.f32.mrf.mxu1 }
  0xf4   : > { %v747_v42 = vadd.f32 %v746_v40, %v745_v38  ;;  %v771_v43 = vadd.f32 %v770_v41, %v769_v39 }
  0xf5   : > { %v748_v44 = vpop.f32.mrf.mxu0  ;;  %v772_v45 = vpop.f32.mrf.mxu1 }
  0xf6   : > { %593 = vst [vmem:[%s1006_s28 + $0x8] sm:$0xff] %v747_v42  ;;  %601 = vst [vmem:[%s1006_s28 + $0x48] sm:$0xff] %v771_v43 }
  0xf7   : > { %v749_v46 = vpop.f32.mrf.mxu0  ;;  %v773_v47 = vpop.f32.mrf.mxu1 }
  0xf8   : > { %v750_v48 = vadd.f32 %v749_v46, %v748_v44  ;;  %v774_v49 = vadd.f32 %v773_v47, %v772_v45 }
  0xf9   : > { %v751_v50 = vpop.f32.mrf.mxu0  ;;  %v775_v51 = vpop.f32.mrf.mxu1 }
  0xfa   : > { %594 = vst [vmem:[%s1006_s28 + $0x10] sm:$0xff] %v750_v48  ;;  %602 = vst [vmem:[%s1006_s28 + $0x50] sm:$0xff] %v774_v49 }
  0xfb   : > { %v752_v52 = vpop.f32.mrf.mxu0  ;;  %v776_v53 = vpop.f32.mrf.mxu1 }
  0xfc   : > { %v753_v54 = vadd.f32 %v752_v52, %v751_v50  ;;  %v777_v55 = vadd.f32 %v776_v53, %v775_v51 }
  0xfd   : > { %v754_v56 = vpop.f32.mrf.mxu0  ;;  %v778_v57 = vpop.f32.mrf.mxu1 }
  0xfe   : > { %595 = vst [vmem:[%s1006_s28 + $0x18] sm:$0xff] %v753_v54  ;;  %603 = vst [vmem:[%s1006_s28 + $0x58] sm:$0xff] %v777_v55 }
  0xff   : > { %v755_v58 = vpop.f32.mrf.mxu0  ;;  %v779_v59 = vpop.f32.mrf.mxu1 }
 0x100   : > { %v756_v60 = vadd.f32 %v755_v58, %v754_v56  ;;  %v780_v61 = vadd.f32 %v779_v59, %v778_v57 }
 0x101   : > { %v757_v62 = vpop.f32.mrf.mxu0  ;;  %v781_v63 = vpop.f32.mrf.mxu1 }
 0x102   : > { %596 = vst [vmem:[%s1006_s28 + $0x20] sm:$0xff] %v756_v60  ;;  %604 = vst [vmem:[%s1006_s28 + $0x60] sm:$0xff] %v780_v61 }
 0x103   : > { %v758_v0 = vpop.f32.mrf.mxu0  ;;  %v782_v1 = vpop.f32.mrf.mxu1 }
 0x104   : > { %v759_v2 = vadd.f32 %v758_v0, %v757_v62  ;;  %v783_v3 = vadd.f32 %v782_v1, %v781_v63 }
 0x105   : > { %v760_v4 = vpop.f32.mrf.mxu0  ;;  %v784_v5 = vpop.f32.mrf.mxu1 }
 0x106   : > { %597 = vst [vmem:[%s1006_s28 + $0x28] sm:$0xff] %v759_v2  ;;  %605 = vst [vmem:[%s1006_s28 + $0x68] sm:$0xff] %v783_v3 }
 0x107   : > { %v761_v6 = vpop.f32.mrf.mxu0  ;;  %v785_v7 = vpop.f32.mrf.mxu1 }
 0x108   : > { %v762_v8 = vadd.f32 %v761_v6, %v760_v4  ;;  %v786_v9 = vadd.f32 %v785_v7, %v784_v5 }
 0x109   : > { %v763_v10 = vpop.f32.mrf.mxu0  ;;  %v787_v11 = vpop.f32.mrf.mxu1 }
 0x10a   : > { %598 = vst [vmem:[%s1006_s28 + $0x30] sm:$0xff] %v762_v8  ;;  %606 = vst [vmem:[%s1006_s28 + $0x70] sm:$0xff] %v786_v9 }
 0x10b   : > { %v764_v12 = vpop.f32.mrf.mxu0  ;;  %v788_v13 = vpop.f32.mrf.mxu1 }
 0x10c   : > { %v765_v14 = vadd.f32 %v764_v12, %v763_v10  ;;  %v789_v15 = vadd.f32 %v788_v13, %v787_v11 }
 0x10e   : > { %599 = vst [vmem:[%s1006_s28 + $0x38] sm:$0xff] %v765_v14  ;;  %607 = vst [vmem:[%s1006_s28 + $0x78] sm:$0xff] %v789_v15 }
 0x10f PF: > { %s12_s11 = sadd.s32 1, %s892_s11   ;;  %s1036_s9 = smov %s888_s10 }
 0x110   : > { %p9_p5 = scmp.ge.s32.totalorder %s12_s11, 4   ;;  %s1037_s10 = smov %s1039_s12 }
 0x112   :  { %11 = sbr.rel (!%p9_p5) target bundleno = 2 (0x2), region = 67 }

// kernel: gcn_forward.14
= control target key start
LH: loop header
LB: loop body
LE: loop exit
PB: predicated region body
PF: predicated region fallthrough
CT: control target
= control target key end

     0   :  { %s1263_s1 = inlined_call_operand.vmem [shape: bf16[256,128], index: 1, kind: input, shape index: {}]   ;;  %s1264_s0 = inlined_call_operand.vmem [shape: bf16[256,256], index: 0, kind: input, shape index: {}]   ;;  %s1265_s2 = inlined_call_operand.vmem [shape: bf16[256,128], index: 2, kind: output, shape index: {}]  }
   0x1   :  { %v992_v0 = vld [vmem:[%s1263_s1 + $0x78] sm:$0xff]   ;;  %v994_v2 = vld [vmem:[%s1263_s1 + $0x70] sm:$0xff]   ;;  %v996_v4 = vld [vmem:[%s1263_s1 + $0x68] sm:$0xff]  }
   0x2   :  { %v993_v1 = vld [vmem:[%s1263_s1 + $0x38] sm:$0xff]   ;;  %864 = vmatprep.subr.bf16.mxu0 %v992_v0  ;;  %976 = vmatprep.subr.bf16.mxu1 %v992_v0  ;;  %v995_v3 = vld [vmem:[%s1263_s1 + $0x30] sm:$0xff]   ;;  %v997_v5 = vld [vmem:[%s1263_s1 + $0x28] sm:$0xff]  }
   0x3   :  { %865 = vmatpush3.bf16.msra.mxu0 %v993_v1  ;;  %984 = vmatpush3.bf16.msra.mxu1 %v993_v1  ;;  %v998_v6 = vld [vmem:[%s1263_s1 + $0x60] sm:$0xff]   ;;  %v1000_v8 = vld [vmem:[%s1263_s1 + $0x58] sm:$0xff]   ;;  %v1002_v10 = vld [vmem:[%s1263_s1 + $0x50] sm:$0xff]  }
   0x4   :  { %866 = vmatprep.subr.bf16.mxu0 %v994_v2  ;;  %977 = vmatprep.subr.bf16.mxu1 %v994_v2  ;;  %v999_v7 = vld [vmem:[%s1263_s1 + $0x20] sm:$0xff]   ;;  %v1001_v9 = vld [vmem:[%s1263_s1 + $0x18] sm:$0xff]   ;;  %v1003_v13 = vld [vmem:[%s1263_s1 + $0x10] sm:$0xff]  }
   0x5   :  { %v1010_v11 = vld [vmem:[%s1264_s0 + $0x4] ss:$8 sps:$4 sm:$0xff]   ;;  %v1008_v18 = vld [vmem:[%s1264_s0] ss:$8 sps:$4 sm:$0xff]   ;;  %v1014_v20 = vld [vmem:[%s1264_s0 + $0x14] ss:$8 sps:$4 sm:$0xff]  }
   0x6   :  { %v1013_v12 = vld [vmem:[%s1264_s0 + $0x84] ss:$8 sps:$4 sm:$0xff]   ;;  %364 = vmatprep.mubr.bf16.mxu0 %v1010_v11  ;;  %v1011_v19 = vld [vmem:[%s1264_s0 + $0x80] ss:$8 sps:$4 sm:$0xff]   ;;  %v1016_v21 = vld [vmem:[%s1264_s0 + $0x94] ss:$8 sps:$4 sm:$0xff]  }
   0x7   :  { %867 = vmatpush3.bf16.msra.mxu0 %v995_v3  ;;  %985 = vmatpush3.bf16.msra.mxu1 %v995_v3  ;;  %v1004_v14 = vld [vmem:[%s1263_s1 + $0x48] sm:$0xff]   ;;  %v1006_v16 = vld [vmem:[%s1263_s1 + $0x40] sm:$0xff]   ;;  %v1018_v22 = vld [vmem:[%s1264_s0 + $0x10] ss:$8 sps:$4 sm:$0xff]  }
   0x8   :  { %868 = vmatprep.subr.bf16.mxu0 %v996_v4  ;;  %978 = vmatprep.subr.bf16.mxu1 %v996_v4  ;;  %v1005_v15 = vld [vmem:[%s1263_s1 + $0x8] sm:$0xff]   ;;  %v1007_v17 = vld [vmem:[%s1263_s1] sm:$0xff]   ;;  %v1019_v23 = vld [vmem:[%s1264_s0 + $0x90] ss:$8 sps:$4 sm:$0xff]  }
   0x9   :  { %428 = vmatprep.mubr.bf16.mxu1 %v1013_v12  ;;  %v1020_v24 = vld [vmem:[%s1264_s0 + $0x24] ss:$8 sps:$4 sm:$0xff]   ;;  %v1024_v26 = vld [vmem:[%s1264_s0 + $0x20] ss:$8 sps:$4 sm:$0xff]   ;;  %v1026_v28 = vld [vmem:[%s1264_s0 + $0x34] ss:$8 sps:$4 sm:$0xff]  }
   0xa   :  { %v1022_v25 = vld [vmem:[%s1264_s0 + $0xa4] ss:$8 sps:$4 sm:$0xff]   ;;  %v1025_v27 = vld [vmem:[%s1264_s0 + $0xa0] ss:$8 sps:$4 sm:$0xff]   ;;  %v1028_v29 = vld [vmem:[%s1264_s0 + $0xb4] ss:$8 sps:$4 sm:$0xff]  }
   0xb   :  { %869 = vmatpush3.bf16.msra.mxu0 %v997_v5  ;;  %986 = vmatpush3.bf16.msra.mxu1 %v997_v5  ;;  %v1030_v30 = vld [vmem:[%s1264_s0 + $0x30] ss:$8 sps:$4 sm:$0xff]   ;;  %v1032_v32 = vld [vmem:[%s1264_s0 + $0x44] ss:$8 sps:$4 sm:$0xff]   ;;  %v1036_v34 = vld [vmem:[%s1264_s0 + $0x40] ss:$8 sps:$4 sm:$0xff]  }
   0xc   :  { %870 = vmatprep.subr.bf16.mxu0 %v998_v6  ;;  %979 = vmatprep.subr.bf16.mxu1 %v998_v6  ;;  %v1031_v31 = vld [vmem:[%s1264_s0 + $0xb0] ss:$8 sps:$4 sm:$0xff]   ;;  %v1034_v33 = vld [vmem:[%s1264_s0 + $0xc4] ss:$8 sps:$4 sm:$0xff]   ;;  %v1037_v35 = vld [vmem:[%s1264_s0 + $0xc0] ss:$8 sps:$4 sm:$0xff]  }
   0xd   :  { %v1038_v36 = vld [vmem:[%s1264_s0 + $0x54] ss:$8 sps:$4 sm:$0xff]   ;;  %v1042_v38 = vld [vmem:[%s1264_s0 + $0x50] ss:$8 sps:$4 sm:$0xff]   ;;  %v1044_v40 = vld [vmem:[%s1264_s0 + $0x64] ss:$8 sps:$4 sm:$0xff]  }
   0xe   :  { %v1040_v37 = vld [vmem:[%s1264_s0 + $0xd4] ss:$8 sps:$4 sm:$0xff]   ;;  %v1043_v39 = vld [vmem:[%s1264_s0 + $0xd0] ss:$8 sps:$4 sm:$0xff]   ;;  %v1046_v41 = vld [vmem:[%s1264_s0 + $0xe4] ss:$8 sps:$4 sm:$0xff]  }
   0xf   :  { %871 = vmatpush3.bf16.msra.mxu0 %v999_v7  ;;  %987 = vmatpush3.bf16.msra.mxu1 %v999_v7  ;;  %v1048_v42 = vld [vmem:[%s1264_s0 + $0x60] ss:$8 sps:$4 sm:$0xff]   ;;  %v1050_v44 = vld [vmem:[%s1264_s0 + $0x74] ss:$8 sps:$4 sm:$0xff]   ;;  %v1054_v46 = vld [vmem:[%s1264_s0 + $0x70] ss:$8 sps:$4 sm:$0xff]  }
  0x10   :  { %872 = vmatprep.subr.bf16.mxu0 %v1000_v8  ;;  %980 = vmatprep.subr.bf16.mxu1 %v1000_v8  ;;  %v1049_v43 = vld [vmem:[%s1264_s0 + $0xe0] ss:$8 sps:$4 sm:$0xff]   ;;  %v1052_v45 = vld [vmem:[%s1264_s0 + $0xf4] ss:$8 sps:$4 sm:$0xff]   ;;  %v1055_v47 = vld [vmem:[%s1264_s0 + $0xf0] ss:$8 sps:$4 sm:$0xff]  }
  0x13   :  { %873 = vmatpush3.bf16.msra.mxu0 %v1001_v9  ;;  %988 = vmatpush3.bf16.msra.mxu1 %v1001_v9 }
  0x14   :  { %874 = vmatprep.subr.bf16.mxu0 %v1002_v10  ;;  %981 = vmatprep.subr.bf16.mxu1 %v1002_v10 }
  0x17   :  { %875 = vmatpush3.bf16.msra.mxu0 %v1003_v13  ;;  %989 = vmatpush3.bf16.msra.mxu1 %v1003_v13 }
  0x18   :  { %876 = vmatprep.subr.bf16.mxu0 %v1004_v14  ;;  %982 = vmatprep.subr.bf16.mxu1 %v1004_v14 }
  0x1b   :  { %877 = vmatpush3.bf16.msra.mxu0 %v1005_v15  ;;  %990 = vmatpush3.bf16.msra.mxu1 %v1005_v15 }
  0x1c   :  { %878 = vmatprep.subr.bf16.mxu0 %v1006_v16  ;;  %983 = vmatprep.subr.bf16.mxu1 %v1006_v16 }
  0x1f   :  { %879 = vmatpush3.bf16.msra.mxu0 %v1007_v17  ;;  %991 = vmatpush3.bf16.msra.mxu1 %v1007_v17 }
  0x22   :  { %365 = vmatmul.mubr.bf16.vlgmr.msra.gmra.mxu0 %v1008_v18  ;;  %429 = vmatmul.mubr.bf16.vlgmr.msra.gmra.mxu1 %v1011_v19 }
  0x23   :  { %372 = vmatprep.mubr.bf16.mxu0 %v1014_v20  ;;  %436 = vmatprep.mubr.bf16.mxu1 %v1016_v21 }
  0x2a   :  { %373 = vmatmul.mubr.bf16.gmra.mxu0 %v1018_v22  ;;  %437 = vmatmul.mubr.bf16.gmra.mxu1 %v1019_v23 }
  0x2b   :  { %380 = vmatprep.mubr.bf16.mxu0 %v1020_v24  ;;  %444 = vmatprep.mubr.bf16.mxu1 %v1022_v25 }
  0x32   :  { %381 = vmatmul.mubr.bf16.gmra.mxu0 %v1024_v26  ;;  %445 = vmatmul.mubr.bf16.gmra.mxu1 %v1025_v27 }
  0x33   :  { %388 = vmatprep.mubr.bf16.mxu0 %v1026_v28  ;;  %452 = vmatprep.mubr.bf16.mxu1 %v1028_v29 }
  0x3a   :  { %389 = vmatmul.mubr.bf16.gmra.mxu0 %v1030_v30  ;;  %453 = vmatmul.mubr.bf16.gmra.mxu1 %v1031_v31 }
  0x3b   :  { %396 = vmatprep.mubr.bf16.mxu0 %v1032_v32  ;;  %460 = vmatprep.mubr.bf16.mxu1 %v1034_v33 }
  0x42   :  { %397 = vmatmul.mubr.bf16.gmra.mxu0 %v1036_v34  ;;  %461 = vmatmul.mubr.bf16.gmra.mxu1 %v1037_v35 }
  0x43   :  { %404 = vmatprep.mubr.bf16.mxu0 %v1038_v36  ;;  %468 = vmatprep.mubr.bf16.mxu1 %v1040_v37 }
  0x4a   :  { %405 = vmatmul.mubr.bf16.gmra.mxu0 %v1042_v38  ;;  %469 = vmatmul.mubr.bf16.gmra.mxu1 %v1043_v39 }
  0x4b   :  { %412 = vmatprep.mubr.bf16.mxu0 %v1044_v40  ;;  %476 = vmatprep.mubr.bf16.mxu1 %v1046_v41 }
  0x52   :  { %413 = vmatmul.mubr.bf16.gmra.mxu0 %v1048_v42  ;;  %477 = vmatmul.mubr.bf16.gmra.mxu1 %v1049_v43 }
  0x53   :  { %420 = vmatprep.mubr.bf16.mxu0 %v1050_v44  ;;  %484 = vmatprep.mubr.bf16.mxu1 %v1052_v45 }
  0x5a   :  { %421 = vmatmul.mubr.bf16.gmra.mxu0 %v1054_v46  ;;  %485 = vmatmul.mubr.bf16.gmra.mxu1 %v1055_v47 }
  0xe2   :  { %v880_v48 = vpop.f32.mrf.mxu0  ;;  %v928_v49 = vpop.f32.mrf.mxu1 }
  0xe4   :  { %v881_v50 = vpop.f32.mrf.mxu0  ;;  %v929_v51 = vpop.f32.mrf.mxu1 }
  0xe5   :  { %v882_v56 = vadd.f32 %v881_v50, %v880_v48  ;;  %v930_v57 = vadd.f32 %v929_v51, %v928_v49 }
  0xe6   :  { %v883_v52 = vpop.f32.mrf.mxu0  ;;  %v931_v53 = vpop.f32.mrf.mxu1 }
  0xe8   :  { %v884_v54 = vpop.f32.mrf.mxu0  ;;  %v932_v55 = vpop.f32.mrf.mxu1 }
  0xe9   :  { %v885_v58 = vadd.f32 %v884_v54, %v883_v52  ;;  %v933_v59 = vadd.f32 %v932_v55, %v931_v53 }
  0xea   :  { %v886_v60 = vpop.f32.mrf.mxu0  ;;  %v934_v61 = vpop.f32.mrf.mxu1 }
  0xeb   :  { %v772_v62 = vpack.c.bf16 %v885_v58, %v882_v56  ;;  %v812_v63 = vpack.c.bf16 %v933_v59, %v930_v57 }
  0xec   :  { %v887_v0 = vpop.f32.mrf.mxu0  ;;  %v935_v1 = vpop.f32.mrf.mxu1 }
  0xed   :  { %773 = vst [vmem:[%s1265_s2] sm:$0xff] %v772_v62   ;;  %856 = vst [vmem:[%s1265_s2 + $0x40] sm:$0xff] %v812_v63   ;;  %v888_v6 = vadd.f32 %v887_v0, %v886_v60  ;;  %v936_v7 = vadd.f32 %v935_v1, %v934_v61 }
  0xee   :  { %v889_v2 = vpop.f32.mrf.mxu0  ;;  %v937_v3 = vpop.f32.mrf.mxu1 }
  0xf0   :  { %v890_v4 = vpop.f32.mrf.mxu0  ;;  %v938_v5 = vpop.f32.mrf.mxu1 }
  0xf1   :  { %v891_v8 = vadd.f32 %v890_v4, %v889_v2  ;;  %v939_v9 = vadd.f32 %v938_v5, %v937_v3 }
  0xf2   :  { %v892_v10 = vpop.f32.mrf.mxu0  ;;  %v940_v11 = vpop.f32.mrf.mxu1 }
  0xf3   :  { %v777_v12 = vpack.c.bf16 %v891_v8, %v888_v6  ;;  %v817_v13 = vpack.c.bf16 %v939_v9, %v936_v7 }
  0xf4   :  { %v893_v14 = vpop.f32.mrf.mxu0  ;;  %v941_v15 = vpop.f32.mrf.mxu1 }
  0xf5   :  { %849 = vst [vmem:[%s1265_s2 + $0x8] sm:$0xff] %v777_v12   ;;  %857 = vst [vmem:[%s1265_s2 + $0x48] sm:$0xff] %v817_v13   ;;  %v894_v20 = vadd.f32 %v893_v14, %v892_v10  ;;  %v942_v21 = vadd.f32 %v941_v15, %v940_v11 }
  0xf6   :  { %v895_v16 = vpop.f32.mrf.mxu0  ;;  %v943_v17 = vpop.f32.mrf.mxu1 }
  0xf8   :  { %v896_v18 = vpop.f32.mrf.mxu0  ;;  %v944_v19 = vpop.f32.mrf.mxu1 }
  0xf9   :  { %v897_v22 = vadd.f32 %v896_v18, %v895_v16  ;;  %v945_v23 = vadd.f32 %v944_v19, %v943_v17 }
  0xfa   :  { %v898_v24 = vpop.f32.mrf.mxu0  ;;  %v946_v25 = vpop.f32.mrf.mxu1 }
  0xfb   :  { %v782_v26 = vpack.c.bf16 %v897_v22, %v894_v20  ;;  %v822_v27 = vpack.c.bf16 %v945_v23, %v942_v21 }
  0xfc   :  { %v899_v28 = vpop.f32.mrf.mxu0  ;;  %v947_v29 = vpop.f32.mrf.mxu1 }
  0xfd   :  { %850 = vst [vmem:[%s1265_s2 + $0x10] sm:$0xff] %v782_v26   ;;  %858 = vst [vmem:[%s1265_s2 + $0x50] sm:$0xff] %v822_v27   ;;  %v900_v34 = vadd.f32 %v899_v28, %v898_v24  ;;  %v948_v35 = vadd.f32 %v947_v29, %v946_v25 }
  0xfe   :  { %v901_v30 = vpop.f32.mrf.mxu0  ;;  %v949_v31 = vpop.f32.mrf.mxu1 }
 0x100   :  { %v902_v32 = vpop.f32.mrf.mxu0  ;;  %v950_v33 = vpop.f32.mrf.mxu1 }
 0x101   :  { %v903_v36 = vadd.f32 %v902_v32, %v901_v30  ;;  %v951_v37 = vadd.f32 %v950_v33, %v949_v31 }
 0x102   :  { %v904_v38 = vpop.f32.mrf.mxu0  ;;  %v952_v39 = vpop.f32.mrf.mxu1 }
 0x103   :  { %v787_v40 = vpack.c.bf16 %v903_v36, %v900_v34  ;;  %v827_v41 = vpack.c.bf16 %v951_v37, %v948_v35 }
 0x104   :  { %v905_v42 = vpop.f32.mrf.mxu0  ;;  %v953_v43 = vpop.f32.mrf.mxu1 }
 0x105   :  { %851 = vst [vmem:[%s1265_s2 + $0x18] sm:$0xff] %v787_v40   ;;  %859 = vst [vmem:[%s1265_s2 + $0x58] sm:$0xff] %v827_v41   ;;  %v906_v48 = vadd.f32 %v905_v42, %v904_v38  ;;  %v954_v49 = vadd.f32 %v953_v43, %v952_v39 }
 0x106   :  { %v907_v44 = vpop.f32.mrf.mxu0  ;;  %v955_v45 = vpop.f32.mrf.mxu1 }
 0x108   :  { %v908_v46 = vpop.f32.mrf.mxu0  ;;  %v956_v47 = vpop.f32.mrf.mxu1 }
 0x109   :  { %v909_v50 = vadd.f32 %v908_v46, %v907_v44  ;;  %v957_v51 = vadd.f32 %v956_v47, %v955_v45 }
 0x10a   :  { %v910_v52 = vpop.f32.mrf.mxu0  ;;  %v958_v53 = vpop.f32.mrf.mxu1 }
 0x10b   :  { %v792_v54 = vpack.c.bf16 %v909_v50, %v906_v48  ;;  %v832_v55 = vpack.c.bf16 %v957_v51, %v954_v49 }
 0x10c   :  { %v911_v56 = vpop.f32.mrf.mxu0  ;;  %v959_v57 = vpop.f32.mrf.mxu1 }
 0x10d   :  { %852 = vst [vmem:[%s1265_s2 + $0x20] sm:$0xff] %v792_v54   ;;  %860 = vst [vmem:[%s1265_s2 + $0x60] sm:$0xff] %v832_v55   ;;  %v912_v62 = vadd.f32 %v911_v56, %v910_v52  ;;  %v960_v63 = vadd.f32 %v959_v57, %v958_v53 }
 0x10e   :  { %v913_v58 = vpop.f32.mrf.mxu0  ;;  %v961_v59 = vpop.f32.mrf.mxu1 }
 0x110   :  { %v914_v60 = vpop.f32.mrf.mxu0  ;;  %v962_v61 = vpop.f32.mrf.mxu1 }
 0x111   :  { %v915_v0 = vadd.f32 %v914_v60, %v913_v58  ;;  %v963_v1 = vadd.f32 %v962_v61, %v961_v59 }
 0x112   :  { %v916_v2 = vpop.f32.mrf.mxu0  ;;  %v964_v3 = vpop.f32.mrf.mxu1 }
 0x113   :  { %v797_v4 = vpack.c.bf16 %v915_v0, %v912_v62  ;;  %v837_v5 = vpack.c.bf16 %v963_v1, %v960_v63 }
 0x114   :  { %v917_v6 = vpop.f32.mrf.mxu0  ;;  %v965_v7 = vpop.f32.mrf.mxu1 }
 0x115   :  { %853 = vst [vmem:[%s1265_s2 + $0x28] sm:$0xff] %v797_v4   ;;  %861 = vst [vmem:[%s1265_s2 + $0x68] sm:$0xff] %v837_v5   ;;  %v918_v12 = vadd.f32 %v917_v6, %v916_v2  ;;  %v966_v13 = vadd.f32 %v965_v7, %v964_v3 }
 0x116   :  { %v919_v8 = vpop.f32.mrf.mxu0  ;;  %v967_v9 = vpop.f32.mrf.mxu1 }
 0x118   :  { %v920_v10 = vpop.f32.mrf.mxu0  ;;  %v968_v11 = vpop.f32.mrf.mxu1 }
 0x119   :  { %v921_v14 = vadd.f32 %v920_v10, %v919_v8  ;;  %v969_v15 = vadd.f32 %v968_v11, %v967_v9 }
 0x11a   :  { %v922_v16 = vpop.f32.mrf.mxu0  ;;  %v970_v17 = vpop.f32.mrf.mxu1 }
 0x11b   :  { %v802_v18 = vpack.c.bf16 %v921_v14, %v918_v12  ;;  %v842_v19 = vpack.c.bf16 %v969_v15, %v966_v13 }
 0x11c   :  { %v923_v20 = vpop.f32.mrf.mxu0  ;;  %v971_v21 = vpop.f32.mrf.mxu1 }
 0x11d   :  { %854 = vst [vmem:[%s1265_s2 + $0x30] sm:$0xff] %v802_v18   ;;  %862 = vst [vmem:[%s1265_s2 + $0x70] sm:$0xff] %v842_v19   ;;  %v924_v26 = vadd.f32 %v923_v20, %v922_v16  ;;  %v972_v27 = vadd.f32 %v971_v21, %v970_v17 }
 0x11e   :  { %v925_v22 = vpop.f32.mrf.mxu0  ;;  %v973_v23 = vpop.f32.mrf.mxu1 }
 0x120   :  { %v926_v24 = vpop.f32.mrf.mxu0  ;;  %v974_v25 = vpop.f32.mrf.mxu1 }
 0x121   :  { %v927_v28 = vadd.f32 %v926_v24, %v925_v22  ;;  %v975_v29 = vadd.f32 %v974_v25, %v973_v23 }
 0x123   :  { %v807_v30 = vpack.c.bf16 %v927_v28, %v924_v26  ;;  %v847_v31 = vpack.c.bf16 %v975_v29, %v972_v27 }
 0x125   :  { %855 = vst [vmem:[%s1265_s2 + $0x38] sm:$0xff] %v807_v30   ;;  %863 = vst [vmem:[%s1265_s2 + $0x78] sm:$0xff] %v847_v31  }

</bundles_post_ra>
